<compile_context>
chip_gen: v7x
topology: tpu7x:2x2x1
jax: 0.10.0
libtpu: 0.0.40
codegen_flags: <defaults>
</compile_context>

<pallas_src>
import jax
import jax.numpy as jnp
from jax.experimental import pallas as pl
from jax.experimental.pallas import tpu as pltpu

AUDIO_DIM = 512
VISUAL_DIM = 512
FUSION_DIM = 512
EMB_DIM = 256
BN_EPS = 1e-5
L2_EPS = 1e-12


def _round_up(x, m):
    return ((x + m - 1) // m) * m


def _itemsize(dt):
    return 2 if dt == jnp.bfloat16 else 4


def _fusion_kernel(a_ref, v_ref,
                   w1a_ref, w1b_ref, b1_ref,
                   w2_ref, b2_ref,
                   w3_ref, b3_ref,
                   femb_ref, prob_ref):
    wdt = w1a_ref.dtype
    a = a_ref[...].astype(wdt)            # (tm, 512)
    v = v_ref[...].astype(wdt)            # (tm, 512)

    # fusion_linear with eval-mode BatchNorm pre-folded into the weights/bias.
    fusion = (jnp.dot(a, w1a_ref[...], preferred_element_type=jnp.float32)
              + jnp.dot(v, w1b_ref[...], preferred_element_type=jnp.float32)
              + b1_ref[...])
    fusion = jnp.maximum(fusion, 0.0)     # ReLU; Dropout(0.25) == identity at eval.

    # fusion_embedding linear.
    femb = (jnp.dot(fusion.astype(wdt), w2_ref[...],
                    preferred_element_type=jnp.float32)
            + b2_ref[...])

    # L2 normalize: single EUP rsqrt on the squared norm
    # (clamping the squared norm at eps^2 == clamping the norm at eps).
    ss = jnp.sum(femb * femb, axis=-1, keepdims=True)
    femb_n = femb * jax.lax.rsqrt(jnp.maximum(ss, L2_EPS * L2_EPS))
    femb_ref[...] = femb_n.astype(femb_ref.dtype)

    # classifier (256 -> 1) as VPU mul + row reduce; probability is stored as a
    # true (tm, 1) column (4 B/row of HBM writeback instead of a 128-wide slab).
    logits = jnp.sum(femb_n * w3_ref[...], axis=-1, keepdims=True) + b3_ref[...]
    prob_ref[...] = jax.nn.sigmoid(logits)


def concat_fusion_forward(audio_emb, video_emb, params, *,
                          block_batch=512,
                          matmul_dtype=jnp.bfloat16,
                          femb_dtype=jnp.float32):
    """Returns (audio_embedding, video_embedding, fusion_embedding, probability).

    matmul_dtype=jnp.bfloat16 (default) is MXU-native on all TPU generations;
    all accumulation and elementwise math remain f32. femb_dtype=jnp.bfloat16
    halves the fusion-embedding writeback if the consumer accepts it.
    """
    B = audio_emb.shape[0]

    # ---- fold eval-mode BatchNorm into the first linear (wrapper-side, f32) ----
    scale = params["gamma"] * jax.lax.rsqrt(params["var"] + BN_EPS)      # (1, 512)
    w1a = (params["w1a"] * scale).astype(matmul_dtype)                   # (512, 512)
    w1b = (params["w1b"] * scale).astype(matmul_dtype)                   # (512, 512)
    b1 = (params["b1"] - params["mean"]) * scale + params["beta"]        # (1, 512) f32
    w2 = params["w2"].astype(matmul_dtype)                               # (512, 256)
    b2 = params["b2"]                                                    # (1, 256) f32
    w3_row = params["w3"].reshape(1, EMB_DIM).astype(jnp.float32)        # (1, 256)
    b3 = params["b3"].reshape(1, 1).astype(jnp.float32)                  # (1, 1)

    # ---- batch tile selection: no jnp.pad; ragged tail handled as a partial block ----
    pack = 16 if matmul_dtype == jnp.bfloat16 else 8   # bf16 sublane packing
    n_tiles = max(1, pl.cdiv(B, max(block_batch, pack)))
    if n_tiles == 1 and B > 256:
        n_tiles = 2            # keep both v7x TensorCores fed on medium batches
    tm = max(pack, _round_up(pl.cdiv(B, n_tiles), pack))
    n_steps = pl.cdiv(B, tm)

    # ---- VMEM estimate: only raise the scoped limit when actually needed ----
    act_bytes = audio_emb.dtype.itemsize
    w_bytes = _itemsize(matmul_dtype)
    femb_bytes = _itemsize(femb_dtype)
    weight_bytes = (((AUDIO_DIM + VISUAL_DIM) * FUSION_DIM + FUSION_DIM * EMB_DIM) * w_bytes
                    + (FUSION_DIM + EMB_DIM + EMB_DIM + 1) * 4)
    est_vmem = (2 * tm * (AUDIO_DIM + VISUAL_DIM) * act_bytes   # double-buffered activations
                + 2 * weight_bytes                              # double-buffered resident weights
                + 2 * tm * EMB_DIM * femb_bytes                 # femb output blocks
                + 2 * tm * 512)                                 # (tm,1) prob block pads to (8,128) tiles
    compiler_kwargs = dict(dimension_semantics=("parallel",))   # megacore batch sharding on v7x
    if est_vmem > 14 * 1024 * 1024:   # v5e default scoped-VMEM limit is 16 MiB
        compiler_kwargs["vmem_limit_bytes"] = min(int(est_vmem * 3 // 2), 48 * 1024 * 1024)

    # ---- advisory cost estimate so XLA schedules the call sensibly ----
    flops = 2 * B * ((AUDIO_DIM + VISUAL_DIM) * FUSION_DIM + FUSION_DIM * EMB_DIM + EMB_DIM)
    bytes_accessed = (B * (AUDIO_DIM + VISUAL_DIM) * act_bytes
                      + weight_bytes
                      + B * EMB_DIM * femb_bytes
                      + B * 4)
    cost = pl.CostEstimate(flops=flops, transcendentals=3 * B,
                           bytes_accessed=bytes_accessed)

    def act_spec(d):
        return pl.BlockSpec((tm, d), lambda i: (i, 0))

    def resident_spec(shape):
        return pl.BlockSpec(shape, lambda i: (0, 0))   # weights stay VMEM-resident

    femb, prob = pl.pallas_call(
        _fusion_kernel,
        out_shape=(
            jax.ShapeDtypeStruct((B, EMB_DIM), femb_dtype),
            jax.ShapeDtypeStruct((B, 1), jnp.float32),
        ),
        grid=(n_steps,),
        in_specs=[
            act_spec(AUDIO_DIM), act_spec(VISUAL_DIM),
            resident_spec((AUDIO_DIM, FUSION_DIM)),
            resident_spec((VISUAL_DIM, FUSION_DIM)),
            resident_spec((1, FUSION_DIM)),
            resident_spec((FUSION_DIM, EMB_DIM)),
            resident_spec((1, EMB_DIM)),
            resident_spec((1, EMB_DIM)),
            resident_spec((1, 1)),
        ],
        out_specs=(
            pl.BlockSpec((tm, EMB_DIM), lambda i: (i, 0)),
            pl.BlockSpec((tm, 1), lambda i: (i, 0)),
        ),
        compiler_params=pltpu.CompilerParams(**compiler_kwargs),
        cost_estimate=cost,
    )(audio_emb, video_emb, w1a, w1b, b1, w2, b2, w3_row, b3)

    return audio_emb, video_emb, femb, prob


def init_params(key):
    """Parameter init mimicking PyTorch Linear defaults, with non-trivial BN stats."""
    ks = jax.random.split(key, 10)

    def linear(kw, kb, fan_in, fan_out):
        bound = 1.0 / jnp.sqrt(fan_in)
        # PyTorch weight is (out, in); store transposed as (in, out).
        w = jax.random.uniform(kw, (fan_in, fan_out), jnp.float32, -bound, bound)
        b = jax.random.uniform(kb, (1, fan_out), jnp.float32, -bound, bound)
        return w, b

    w1, b1 = linear(ks[0], ks[1], AUDIO_DIM + VISUAL_DIM, FUSION_DIM)
    w2, b2 = linear(ks[2], ks[3], FUSION_DIM, EMB_DIM)
    w3, b3 = linear(ks[4], ks[5], EMB_DIM, 1)

    return {
        "w1a": w1[:AUDIO_DIM, :],          # acts on audio half of the concat
        "w1b": w1[AUDIO_DIM:, :],          # acts on video half of the concat
        "b1": b1,
        # non-trivial BatchNorm running stats so the BN folding is actually tested
        "gamma": jax.random.uniform(ks[6], (1, FUSION_DIM), jnp.float32, 0.5, 1.5),
        "beta": 0.1 * jax.random.normal(ks[7], (1, FUSION_DIM), jnp.float32),
        "mean": 0.1 * jax.random.normal(ks[8], (1, FUSION_DIM), jnp.float32),
        "var": jax.random.uniform(ks[9], (1, FUSION_DIM), jnp.float32, 0.5, 1.5),
        "w2": w2, "b2": b2,
        "w3": w3, "b3": b3,
    }


def _reference(audio_emb, video_emb, p):
    """Pure-JAX reference with the original (un-folded) BatchNorm math."""
    combined = jnp.concatenate([audio_emb, video_emb], axis=1)
    w1 = jnp.concatenate([p["w1a"], p["w1b"]], axis=0)
    fusion = combined @ w1 + p["b1"]
    fusion = (fusion - p["mean"]) / jnp.sqrt(p["var"] + BN_EPS) * p["gamma"] + p["beta"]
    fusion = jnp.maximum(fusion, 0.0)
    femb = fusion @ p["w2"] + p["b2"]
    femb = femb / jnp.maximum(jnp.linalg.norm(femb, axis=1, keepdims=True), L2_EPS)
    prob = jax.nn.sigmoid(femb @ p["w3"] + p["b3"])
    return femb, prob


if __name__ == "__main__":
    key = jax.random.PRNGKey(0)
    params = init_params(jax.random.fold_in(key, 1234))

    def run_and_check(B, tol_femb, tol_prob, **kwargs):
        ka, kv = jax.random.split(jax.random.fold_in(key, B))
        a = jax.random.normal(ka, (B, AUDIO_DIM), jnp.float32)
        v = jax.random.normal(kv, (B, VISUAL_DIM), jnp.float32)
        a_o, v_o, femb, prob = jax.block_until_ready(
            concat_fusion_forward(a, v, params, **kwargs))
        femb_ref, prob_ref = _reference(a, v, params)
        assert femb.shape == (B, EMB_DIM) and prob.shape == (B, 1)
        assert jnp.allclose(jnp.asarray(femb, jnp.float32), femb_ref,
                            atol=tol_femb, rtol=tol_femb)
        assert jnp.allclose(prob, prob_ref, atol=tol_prob, rtol=tol_prob)
        assert jnp.allclose(a_o, a) and jnp.allclose(v_o, v)

    # f32 matmul path, tight tolerance (single small tile).
    run_and_check(8, 1e-4, 1e-5, matmul_dtype=jnp.float32)
    # bf16 default path (recommended on v5e/v6e/v7x), loose tolerance.
    run_and_check(8, 3e-2, 3e-2)
    # ragged batch -> single partial block, no jnp.pad.
    run_and_check(19, 3e-2, 3e-2)
    # medium batch -> split into 2 tiles (megacore) with a ragged last block.
    run_and_check(300, 3e-2, 3e-2)

    print("KERNEL_OK")
</pallas_src>

<mosaic_0001>
module attributes {stable_mosaic.version = 11 : i64} {
  func.func @_fusion_kernel(%arg0: i32, %arg1: memref<8x512xf32, #tpu.memory_space<vmem>>, %arg2: memref<8x512xf32, #tpu.memory_space<vmem>>, %arg3: memref<512x512xf32, #tpu.memory_space<vmem>>, %arg4: memref<512x512xf32, #tpu.memory_space<vmem>>, %arg5: memref<1x512xf32, #tpu.memory_space<vmem>>, %arg6: memref<512x256xf32, #tpu.memory_space<vmem>>, %arg7: memref<1x256xf32, #tpu.memory_space<vmem>>, %arg8: memref<1x256xf32, #tpu.memory_space<vmem>>, %arg9: memref<1x1xf32, #tpu.memory_space<vmem>>, %arg10: memref<8x256xf32, #tpu.memory_space<vmem>>, %arg11: memref<8x1xf32, #tpu.memory_space<vmem>>) attributes {dimension_semantics = [#tpu.dimension_semantics<parallel>], iteration_bounds = array<i64: 1>, scalar_prefetch = 0 : i64, scratch_operands = 0 : i64, tpu.core_type = #tpu.core_type<tc>, window_params = [{transform_indices = @transform_0, window_bounds = array<i64: 8, 512>}, {transform_indices = @transform_1, window_bounds = array<i64: 8, 512>}, {pipeline_mode = #tpu.pipeline_mode<synchronous>, transform_indices = @transform_2, window_bounds = array<i64: 512, 512>}, {pipeline_mode = #tpu.pipeline_mode<synchronous>, transform_indices = @transform_3, window_bounds = array<i64: 512, 512>}, {pipeline_mode = #tpu.pipeline_mode<synchronous>, transform_indices = @transform_4, window_bounds = array<i64: 1, 512>}, {pipeline_mode = #tpu.pipeline_mode<synchronous>, transform_indices = @transform_5, window_bounds = array<i64: 512, 256>}, {pipeline_mode = #tpu.pipeline_mode<synchronous>, transform_indices = @transform_6, window_bounds = array<i64: 1, 256>}, {pipeline_mode = #tpu.pipeline_mode<synchronous>, transform_indices = @transform_7, window_bounds = array<i64: 1, 256>}, {pipeline_mode = #tpu.pipeline_mode<synchronous>, transform_indices = @transform_8, window_bounds = array<i64: 1, 1>}, {transform_indices = @transform_9, window_bounds = array<i64: 8, 256>}, {transform_indices = @transform_10, window_bounds = array<i64: 8, 1>}]} {
    %c0 = arith.constant 0 : index
    %c0_0 = arith.constant 0 : index
    %0 = vector.load %arg1[%c0, %c0_0] : memref<8x512xf32, #tpu.memory_space<vmem>>, vector<8x512xf32>
    %c0_1 = arith.constant 0 : index
    %c0_2 = arith.constant 0 : index
    %1 = vector.load %arg2[%c0_1, %c0_2] : memref<8x512xf32, #tpu.memory_space<vmem>>, vector<8x512xf32>
    %c0_3 = arith.constant 0 : index
    %c0_4 = arith.constant 0 : index
    %2 = vector.load %arg3[%c0_3, %c0_4] : memref<512x512xf32, #tpu.memory_space<vmem>>, vector<512x512xf32>
    %cst = arith.constant dense<0.000000e+00> : vector<8x512xf32>
    %3 = tpu.matmul %0, %2, %cst {dimension_numbers = #tpu.dot_dimension_numbers<[1], [0], [0], [1], [0, 0, 1, 1], [], []>} : vector<8x512xf32>, vector<512x512xf32>, vector<8x512xf32> -> vector<8x512xf32>
    %c0_5 = arith.constant 0 : index
    %c0_6 = arith.constant 0 : index
    %4 = vector.load %arg4[%c0_5, %c0_6] : memref<512x512xf32, #tpu.memory_space<vmem>>, vector<512x512xf32>
    %cst_7 = arith.constant dense<0.000000e+00> : vector<8x512xf32>
    %5 = tpu.matmul %1, %4, %cst_7 {dimension_numbers = #tpu.dot_dimension_numbers<[1], [0], [0], [1], [0, 0, 1, 1], [], []>} : vector<8x512xf32>, vector<512x512xf32>, vector<8x512xf32> -> vector<8x512xf32>
    %6 = arith.addf %3, %5 : vector<8x512xf32>
    %c0_8 = arith.constant 0 : index
    %c0_9 = arith.constant 0 : index
    %7 = vector.load %arg5[%c0_8, %c0_9] : memref<1x512xf32, #tpu.memory_space<vmem>>, vector<1x512xf32>
    %8 = vector.broadcast %7 : vector<1x512xf32> to vector<8x512xf32>
    %9 = arith.addf %6, %8 : vector<8x512xf32>
    %cst_10 = arith.constant 0.000000e+00 : f32
    %10 = vector.broadcast %cst_10 : f32 to vector<8x512xf32>
    %11 = arith.maximumf %9, %10 : vector<8x512xf32>
    %c0_11 = arith.constant 0 : index
    %c0_12 = arith.constant 0 : index
    %12 = vector.load %arg6[%c0_11, %c0_12] : memref<512x256xf32, #tpu.memory_space<vmem>>, vector<512x256xf32>
    %cst_13 = arith.constant dense<0.000000e+00> : vector<8x256xf32>
    %13 = tpu.matmul %11, %12, %cst_13 {dimension_numbers = #tpu.dot_dimension_numbers<[1], [0], [0], [1], [0, 0, 1, 1], [], []>} : vector<8x512xf32>, vector<512x256xf32>, vector<8x256xf32> -> vector<8x256xf32>
    %c0_14 = arith.constant 0 : index
    %c0_15 = arith.constant 0 : index
    %14 = vector.load %arg7[%c0_14, %c0_15] : memref<1x256xf32, #tpu.memory_space<vmem>>, vector<1x256xf32>
    %15 = vector.broadcast %14 : vector<1x256xf32> to vector<8x256xf32>
    %16 = arith.addf %13, %15 : vector<8x256xf32>
    %17 = arith.mulf %16, %16 : vector<8x256xf32>
    %cst_16 = arith.constant dense<0.000000e+00> : vector<8xf32>
    %18 = vector.multi_reduction <add>, %17, %cst_16 [1] : vector<8x256xf32> to vector<8xf32>
    %19 = vector.shape_cast %18 : vector<8xf32> to vector<8x1xf32>
    %cst_17 = arith.constant 1.000000e-24 : f32
    %20 = vector.broadcast %cst_17 : f32 to vector<8x1xf32>
    %21 = arith.maximumf %19, %20 : vector<8x1xf32>
    %22 = math.rsqrt %21 : vector<8x1xf32>
    %23 = vector.broadcast %22 : vector<8x1xf32> to vector<8x256xf32>
    %24 = arith.mulf %16, %23 : vector<8x256xf32>
    %c0_18 = arith.constant 0 : index
    %c0_19 = arith.constant 0 : index
    %25 = vector.load %arg10[%c0_18, %c0_19] : memref<8x256xf32, #tpu.memory_space<vmem>>, vector<8x256xf32>
    tpu.vector_store %arg10[%c0_18, %c0_19], %24 {strides = array<i32>} : memref<8x256xf32, #tpu.memory_space<vmem>>, vector<8x256xf32>,
    %c0_20 = arith.constant 0 : index
    %c0_21 = arith.constant 0 : index
    %26 = vector.load %arg8[%c0_20, %c0_21] : memref<1x256xf32, #tpu.memory_space<vmem>>, vector<1x256xf32>
    %27 = vector.broadcast %26 : vector<1x256xf32> to vector<8x256xf32>
    %28 = arith.mulf %24, %27 : vector<8x256xf32>
    %cst_22 = arith.constant dense<0.000000e+00> : vector<8xf32>
    %29 = vector.multi_reduction <add>, %28, %cst_22 [1] : vector<8x256xf32> to vector<8xf32>
    %30 = vector.shape_cast %29 : vector<8xf32> to vector<8x1xf32>
    %c0_23 = arith.constant 0 : index
    %c0_24 = arith.constant 0 : index
    %31 = vector.load %arg9[%c0_23, %c0_24] : memref<1x1xf32, #tpu.memory_space<vmem>>, vector<1x1xf32>
    %32 = vector.broadcast %31 : vector<1x1xf32> to vector<8x1xf32>
    %33 = arith.addf %30, %32 : vector<8x1xf32>
    %34 = arith.negf %33 : vector<8x1xf32>
    %35 = math.exp %34 : vector<8x1xf32>
    %cst_25 = arith.constant 1.000000e+00 : f32
    %36 = vector.broadcast %cst_25 : f32 to vector<8x1xf32>
    %37 = arith.addf %36, %35 : vector<8x1xf32>
    %38 = arith.divf %36, %37 : vector<8x1xf32>
    %c0_26 = arith.constant 0 : index
    %c0_27 = arith.constant 0 : index
    %39 = vector.load %arg11[%c0_26, %c0_27] : memref<8x1xf32, #tpu.memory_space<vmem>>, vector<8x1xf32>
    tpu.vector_store %arg11[%c0_26, %c0_27], %38 {strides = array<i32>} : memref<8x1xf32, #tpu.memory_space<vmem>>, vector<8x1xf32>,
    return
  }
  func.func @transform_0(%arg0: i32) -> (i32, i32) {
    %c0_i32 = arith.constant 0 : i32
    %c0_i32_0 = arith.constant 0 : i32
    return %arg0, %c0_i32 : i32, i32
  }
  func.func @transform_1(%arg0: i32) -> (i32, i32) {
    %c0_i32 = arith.constant 0 : i32
    %c0_i32_0 = arith.constant 0 : i32
    return %arg0, %c0_i32 : i32, i32
  }
  func.func @transform_2(%arg0: i32) -> (i32, i32) {
    %c0_i32 = arith.constant 0 : i32
    %c0_i32_0 = arith.constant 0 : i32
    %c0_i32_1 = arith.constant 0 : i32
    return %c0_i32, %c0_i32_0 : i32, i32
  }
  func.func @transform_3(%arg0: i32) -> (i32, i32) {
    %c0_i32 = arith.constant 0 : i32
    %c0_i32_0 = arith.constant 0 : i32
    %c0_i32_1 = arith.constant 0 : i32
    return %c0_i32, %c0_i32_0 : i32, i32
  }
  func.func @transform_4(%arg0: i32) -> (i32, i32) {
    %c0_i32 = arith.constant 0 : i32
    %c0_i32_0 = arith.constant 0 : i32
    %c0_i32_1 = arith.constant 0 : i32
    return %c0_i32, %c0_i32_0 : i32, i32
  }
  func.func @transform_5(%arg0: i32) -> (i32, i32) {
    %c0_i32 = arith.constant 0 : i32
    %c0_i32_0 = arith.constant 0 : i32
    %c0_i32_1 = arith.constant 0 : i32
    return %c0_i32, %c0_i32_0 : i32, i32
  }
  func.func @transform_6(%arg0: i32) -> (i32, i32) {
    %c0_i32 = arith.constant 0 : i32
    %c0_i32_0 = arith.constant 0 : i32
    %c0_i32_1 = arith.constant 0 : i32
    return %c0_i32, %c0_i32_0 : i32, i32
  }
  func.func @transform_7(%arg0: i32) -> (i32, i32) {
    %c0_i32 = arith.constant 0 : i32
    %c0_i32_0 = arith.constant 0 : i32
    %c0_i32_1 = arith.constant 0 : i32
    return %c0_i32, %c0_i32_0 : i32, i32
  }
  func.func @transform_8(%arg0: i32) -> (i32, i32) {
    %c0_i32 = arith.constant 0 : i32
    %c0_i32_0 = arith.constant 0 : i32
    %c0_i32_1 = arith.constant 0 : i32
    return %c0_i32, %c0_i32_0 : i32, i32
  }
  func.func @transform_9(%arg0: i32) -> (i32, i32) {
    %c0_i32 = arith.constant 0 : i32
    %c0_i32_0 = arith.constant 0 : i32
    return %arg0, %c0_i32 : i32, i32
  }
  func.func @transform_10(%arg0: i32) -> (i32, i32) {
    %c0_i32 = arith.constant 0 : i32
    %c0_i32_0 = arith.constant 0 : i32
    return %arg0, %c0_i32 : i32, i32
  }
}

</mosaic_0001>

<bundles_post_ra>
// kernel: tpu_custom_call.1
= control target key start
LH: loop header
LB: loop body
LE: loop exit
PB: predicated region body
PF: predicated region fallthrough
CT: control target
= control target key end

     0   :  { %s2595_s0 = inlined_call_operand.hbm [shape: f32[8,512], index: 0, kind: input, shape index: {}]   ;;  %s2596_s1 = inlined_call_operand.hbm [shape: f32[8,512], index: 1, kind: input, shape index: {}]   ;;  %s2597_s2 = inlined_call_operand.hbm [shape: f32[512,512], index: 2, kind: input, shape index: {}]   ;;  %s2598_s3 = inlined_call_operand.hbm [shape: f32[512,512], index: 3, kind: input, shape index: {}]   ;;  %s2599_s4 = inlined_call_operand.vmem [shape: f32[1,512], index: 4, kind: input, shape index: {}]   ;;  %s2600_s5 = inlined_call_operand.hbm [shape: f32[512,256], index: 5, kind: input, shape index: {}]   ;;  %s2601_s6 = inlined_call_operand.vmem [shape: f32[1,256], index: 6, kind: input, shape index: {}]   ;;  %s2602_s7 = inlined_call_operand.vmem [shape: f32[1,256], index: 7, kind: input, shape index: {}]   ;;  %s2603_s8 = inlined_call_operand.<no memory space> [shape: f32[1,1], index: 8, kind: input, shape index: {}]   ;;  %s2604_s9 = inlined_call_operand.hbm [shape: f32[8,256], index: 9, kind: output, shape index: {0}]   ;;  %s2605_s10 = inlined_call_operand.vmem [shape: f32[8,1], index: 10, kind: output, shape index: {1}]  }
   0x1   :  { %v16_v0 = vstv %s2603_s8 }
   0x2   :  { %17 = vst [vmem:[#allocation2] sm:$0x1] %v16_v0 }
   0x3   :  { %18 = vsyncpa [#allocation4], 0 }
   0x4   :  { %19 = vsyncpa [#allocation7], 0 }
   0x5   :  { %20 = vsyncpa [#allocation10], 0 }
   0x6   :  { %21 = vsyncpa [#allocation5], 0  ;;  %s2381_s15 = smov [#allocation6]   ;;  %s2241_s19 = scalar_lea.hbm %s2596_s1, 512 }
   0x7   :  { %s38_s16 = sshll.u32 %s2381_s15, 4  ;;  %p2242_p0 = scmp.ne.s32.totalorder %s2596_s1, %s2241_s19  ;;  %s39_s16 = int_to_ptr.vmem [resolvable:$true] %s38_s16 }
   0x8   :  { %p2245_p1 = scmp.lt.u32.totalorder %s2241_s19, %s2596_s1 }
   0xa   :  { %p2247_p2 = pnand %p2245_p1, %p2242_p0 }
   0xc   :  { %2250 = shalt.err (!%p2247_p2)
}
   0xd   :  { %s2251_s8 = scalar_lea.vmem %s39_s16, 512  ;;  %p2256_p4 = scmp.lt.s32.totalorder %s39_s16, %s39_s16 }
   0xe   :  { %p2252_p3 = scmp.ne.s32.totalorder %s39_s16, %s2251_s8  ;;  %p2257_p5 = scmp.lt.s32.totalorder %s2251_s8, %s2251_s8 }
  0x10   :  { %p2258_p6 = por %p2257_p5, %p2256_p4 }
  0x12   :  { %p2259_p7 = pnand %p2258_p6, %p2252_p3 }
  0x14   :  { %2262 = shalt.err (!%p2259_p7)
}
  0x15   :  { %41 = dma.hbm_to_vmem [thread:$0]  %s2596_s1, 512, %s39_s16, [#allocation7]  }
  0x16   :  { %s2382_s26 = smov [#allocation9]   ;;  %s2383_s28 = smov [#allocation3]  }
  0x17   :  { %s59_s27 = sshll.u32 %s2382_s26, 4  ;;  %s28_s29 = sshll.u32 %s2383_s28, 4  ;;  %s60_s27 = int_to_ptr.vmem [resolvable:$true] %s59_s27  ;;  %s29_s29 = int_to_ptr.vmem [resolvable:$true] %s28_s29 }
  0x18   :  { %s2263_s12 = scalar_lea.hbm %s2598_s3, 32768 }
  0x19   :  { %p2264_p8 = scmp.ne.s32.totalorder %s2598_s3, %s2263_s12  ;;  %p2267_p9 = scmp.lt.u32.totalorder %s2263_s12, %s2598_s3 }
  0x1b   :  { %p2269_p10 = pnand %p2267_p9, %p2264_p8 }
  0x1d   :  { %2272 = shalt.err (!%p2269_p10)
}
  0x1e   :  { %s2273_s1 = scalar_lea.vmem %s60_s27, 32768  ;;  %p2278_p12 = scmp.lt.s32.totalorder %s60_s27, %s60_s27 }
  0x1f   :  { %p2274_p11 = scmp.ne.s32.totalorder %s60_s27, %s2273_s1  ;;  %p2279_p13 = scmp.lt.s32.totalorder %s2273_s1, %s2273_s1 }
  0x21   :  { %p2280_p0 = por %p2279_p13, %p2278_p12 }
  0x23   :  { %p2281_p1 = pnand %p2280_p0, %p2274_p11 }
  0x25   :  { %2284 = shalt.err (!%p2281_p1)
}
  0x26   :  { %s2384_s16 = smov 512   ;;  %s2385_s18 = smov 32  }
  0x27   :  { %65 = dma.hbm_to_vmem [thread:$0]  %s2598_s3, 32768, %s60_s27, [#allocation10], %s2384_s16, %s2384_s16, %s2385_s18  }
  0x28   :  { %s2285_s23 = scalar_lea.hbm %s2595_s0, 512 }
  0x29   :  { %p2286_p2 = scmp.ne.s32.totalorder %s2595_s0, %s2285_s23  ;;  %p2289_p3 = scmp.lt.u32.totalorder %s2285_s23, %s2595_s0 }
  0x2b   :  { %p2291_p4 = pnand %p2289_p3, %p2286_p2 }
  0x2d   :  { %2294 = shalt.err (!%p2291_p4)
}
  0x2e   :  { %s2295_s28 = scalar_lea.vmem %s29_s29, 512  ;;  %p2300_p6 = scmp.lt.s32.totalorder %s29_s29, %s29_s29 }
  0x2f   :  { %p2296_p5 = scmp.ne.s32.totalorder %s29_s29, %s2295_s28  ;;  %p2301_p7 = scmp.lt.s32.totalorder %s2295_s28, %s2295_s28 }
  0x31   :  { %p2302_p8 = por %p2301_p7, %p2300_p6 }
  0x33   :  { %p2303_p9 = pnand %p2302_p8, %p2296_p5 }
  0x35   :  { %2306 = shalt.err (!%p2303_p9)
}
  0x36   :  { %31 = dma.hbm_to_vmem [thread:$0]  %s2595_s0, 512, %s29_s29, [#allocation4]  }
  0x37   :  { %s2386_s30 = smov [#allocation8]   ;;  %s2387_s12 = smov [#allocation11]  }
  0x38   :  { %s47_s11 = sshll.u32 %s2386_s30, 4  ;;  %s73_s13 = sshll.u32 %s2387_s12, 4  ;;  %s48_s11 = int_to_ptr.vmem [resolvable:$true] %s47_s11  ;;  %s74_s13 = int_to_ptr.vmem [resolvable:$true] %s73_s13 }
  0x39   :  { %s2307_s17 = scalar_lea.hbm %s2597_s2, 32768 }
  0x3a   :  { %p2308_p10 = scmp.ne.s32.totalorder %s2597_s2, %s2307_s17  ;;  %p2311_p11 = scmp.lt.u32.totalorder %s2307_s17, %s2597_s2 }
  0x3c   :  { %p2313_p12 = pnand %p2311_p11, %p2308_p10 }
  0x3e   :  { %2316 = shalt.err (!%p2313_p12)
}
  0x3f   :  { %s2317_s0 = scalar_lea.vmem %s48_s11, 32768  ;;  %p2322_p0 = scmp.lt.s32.totalorder %s48_s11, %s48_s11 }
  0x40   :  { %p2318_p13 = scmp.ne.s32.totalorder %s48_s11, %s2317_s0  ;;  %p2323_p1 = scmp.lt.s32.totalorder %s2317_s0, %s2317_s0 }
  0x42   :  { %p2324_p2 = por %p2323_p1, %p2322_p0 }
  0x44   :  { %p2325_p3 = pnand %p2324_p2, %p2318_p13 }
  0x46   :  { %2328 = shalt.err (!%p2325_p3)
}
  0x47   :  { %53 = dma.hbm_to_vmem [thread:$0]  %s2597_s2, 32768, %s48_s11, [#allocation7], %s2384_s16, %s2384_s16, %s2385_s18  }
  0x48   :  { %s2329_s24 = scalar_lea.hbm %s2600_s5, 16384 }
  0x49   :  { %p2330_p4 = scmp.ne.s32.totalorder %s2600_s5, %s2329_s24  ;;  %p2333_p5 = scmp.lt.u32.totalorder %s2329_s24, %s2600_s5 }
  0x4b   :  { %p2335_p6 = pnand %p2333_p5, %p2330_p4 }
  0x4d   :  { %2338 = shalt.err (!%p2335_p6)
}
  0x4e   :  { %s2339_s27 = scalar_lea.vmem %s74_s13, 16384  ;;  %p2344_p8 = scmp.lt.s32.totalorder %s74_s13, %s74_s13 }
  0x4f   :  { %p2340_p7 = scmp.ne.s32.totalorder %s74_s13, %s2339_s27  ;;  %p2345_p9 = scmp.lt.s32.totalorder %s2339_s27, %s2339_s27 }
  0x51   :  { %p2346_p10 = por %p2345_p9, %p2344_p8 }
  0x53   :  { %p2347_p11 = pnand %p2346_p10, %p2340_p7 }
  0x55   :  { %2350 = shalt.err (!%p2347_p11)
}
  0x56   :  { %s2388_s2 = smov 256   ;;  %s2389_s16 = smov 16  }
  0x57   :  { %79 = dma.hbm_to_vmem [thread:$0]  %s2600_s5, 16384, %s74_s13, [#allocation10], %s2388_s2, %s2388_s2, %s2389_s16  }
  0x58   :  { %2373 = dma.done.wait [#allocation4], 512  }
  0x59   :  { %2374 = vsyncadd [#allocation4], 4294966784 }
  0x5a   :  { %2375 = dma.done.wait [#allocation7], 33280  }
  0x5b   :  { %2376 = vsyncadd [#allocation7], 4294934016 }
  0x5c   :  { %2377 = dma.done.wait [#allocation10], 49152  }
  0x5d   :  { %2378 = vsyncadd [#allocation10], 4294918144  ;;  %v366_v1 = vld [vmem:[#allocation9 + $0x8] sm:$0xff]  ;;  %v365_v6 = vld [vmem:[#allocation9] sm:$0xff] }
  0x5e   :  { %v370_v2 = vld [vmem:[#allocation9 + $0x28] sm:$0xff]  ;;  %v369_v7 = vld [vmem:[#allocation9 + $0x20] sm:$0xff] }
  0x5f   :  { %v494_v3 = vld [vmem:[#allocation9 + $0x408] sm:$0xff]  ;;  %v1568_v4 = vpack.c.bf16 %v370_v2, %v366_v1  ;;  %v1570_v9 = vpack.c.bf16 %v369_v7, %v365_v6  ;;  %v493_v10 = vld [vmem:[#allocation9 + $0x400] sm:$0xff] }
  0x60   :  { %v498_v5 = vld [vmem:[#allocation9 + $0x428] sm:$0xff]  ;;  %v497_v11 = vld [vmem:[#allocation9 + $0x420] sm:$0xff] }
  0x61   :  { %v1632_v8 = vpack.c.bf16 %v498_v5, %v494_v3  ;;  %v374_v12 = vld [vmem:[#allocation9 + $0x48] sm:$0xff]  ;;  %1569 = vmatprep.subr.bf16.mxu1 %v1568_v4  ;;  %v1634_v13 = vpack.c.bf16 %v497_v11, %v493_v10  ;;  %v373_v19 = vld [vmem:[#allocation9 + $0x40] sm:$0xff] }
  0x62   :  { %v378_v14 = vld [vmem:[#allocation9 + $0x68] sm:$0xff]  ;;  %1571 = vmatpush1.bf16.msra.mxu1 %v1570_v9  ;;  %v377_v20 = vld [vmem:[#allocation9 + $0x60] sm:$0xff] }
  0x63   :  { %v502_v15 = vld [vmem:[#allocation9 + $0x448] sm:$0xff]  ;;  %1633 = vmatprep.subr.bf16.mxu0 %v1632_v8  ;;  %v1572_v17 = vpack.c.bf16 %v378_v14, %v374_v12  ;;  %v501_v21 = vld [vmem:[#allocation9 + $0x440] sm:$0xff]  ;;  %v1574_v22 = vpack.c.bf16 %v377_v20, %v373_v19 }
  0x64   :  { %v506_v16 = vld [vmem:[#allocation9 + $0x468] sm:$0xff]  ;;  %1635 = vmatpush1.bf16.msra.mxu0 %v1634_v13  ;;  %v505_v23 = vld [vmem:[#allocation9 + $0x460] sm:$0xff] }
  0x65   :  { %v1636_v18 = vpack.c.bf16 %v506_v16, %v502_v15  ;;  %v382_v24 = vld [vmem:[#allocation9 + $0x88] sm:$0xff]  ;;  %1573 = vmatprep.subr.bf16.mxu1 %v1572_v17  ;;  %v1638_v26 = vpack.c.bf16 %v505_v23, %v501_v21  ;;  %v381_v30 = vld [vmem:[#allocation9 + $0x80] sm:$0xff] }
  0x66   :  { %v386_v25 = vld [vmem:[#allocation9 + $0xa8] sm:$0xff]  ;;  %v385_v32 = vld [vmem:[#allocation9 + $0xa0] sm:$0xff]  ;;  %1575 = vmatpush1.bf16.msra.mxu1 %v1574_v22 }
  0x67   :  { %1637 = vmatprep.subr.bf16.mxu0 %v1636_v18  ;;  %v1576_v27 = vpack.c.bf16 %v386_v25, %v382_v24  ;;  %v510_v28 = vld [vmem:[#allocation9 + $0x488] sm:$0xff]  ;;  %v509_v33 = vld [vmem:[#allocation9 + $0x480] sm:$0xff]  ;;  %v1578_v35 = vpack.c.bf16 %v385_v32, %v381_v30 }
  0x68   :  { %v514_v29 = vld [vmem:[#allocation9 + $0x4a8] sm:$0xff]  ;;  %v513_v34 = vld [vmem:[#allocation9 + $0x4a0] sm:$0xff]  ;;  %1639 = vmatpush1.bf16.msra.mxu0 %v1638_v26 }
  0x69   :  { %v1640_v31 = vpack.c.bf16 %v514_v29, %v510_v28  ;;  %v390_v36 = vld [vmem:[#allocation9 + $0xc8] sm:$0xff]  ;;  %1577 = vmatprep.subr.bf16.mxu1 %v1576_v27  ;;  %v1642_v39 = vpack.c.bf16 %v513_v34, %v509_v33  ;;  %v389_v42 = vld [vmem:[#allocation9 + $0xc0] sm:$0xff] }
  0x6a   :  { %v394_v37 = vld [vmem:[#allocation9 + $0xe8] sm:$0xff]  ;;  %v393_v43 = vld [vmem:[#allocation9 + $0xe0] sm:$0xff]  ;;  %1579 = vmatpush1.bf16.msra.mxu1 %v1578_v35 }
  0x6b   :  { %v518_v38 = vld [vmem:[#allocation9 + $0x4c8] sm:$0xff]  ;;  %v1580_v40 = vpack.c.bf16 %v394_v37, %v390_v36  ;;  %1641 = vmatprep.subr.bf16.mxu0 %v1640_v31  ;;  %v517_v45 = vld [vmem:[#allocation9 + $0x4c0] sm:$0xff]  ;;  %v1582_v51 = vpack.c.bf16 %v393_v43, %v389_v42 }
  0x6c   :  { %v522_v41 = vld [vmem:[#allocation9 + $0x4e8] sm:$0xff]  ;;  %v521_v46 = vld [vmem:[#allocation9 + $0x4e0] sm:$0xff]  ;;  %1643 = vmatpush1.bf16.msra.mxu0 %v1642_v39 }
  0x6d   :  { %v1644_v44 = vpack.c.bf16 %v522_v41, %v518_v38  ;;  %v398_v47 = vld [vmem:[#allocation9 + $0x108] sm:$0xff]  ;;  %1581 = vmatprep.subr.bf16.mxu1 %v1580_v40  ;;  %v1646_v52 = vpack.c.bf16 %v521_v46, %v517_v45  ;;  %v397_v54 = vld [vmem:[#allocation9 + $0x100] sm:$0xff] }
  0x6e   :  { %v402_v48 = vld [vmem:[#allocation9 + $0x128] sm:$0xff]  ;;  %v401_v55 = vld [vmem:[#allocation9 + $0x120] sm:$0xff]  ;;  %1583 = vmatpush1.bf16.msra.mxu1 %v1582_v51 }
  0x6f   :  { %v526_v49 = vld [vmem:[#allocation9 + $0x508] sm:$0xff]  ;;  %v1584_v53 = vpack.c.bf16 %v402_v48, %v398_v47  ;;  %v525_v56 = vld [vmem:[#allocation9 + $0x500] sm:$0xff]  ;;  %1645 = vmatprep.subr.bf16.mxu0 %v1644_v44  ;;  %v1586_v63 = vpack.c.bf16 %v401_v55, %v397_v54 }
  0x70   :  { %v530_v50 = vld [vmem:[#allocation9 + $0x528] sm:$0xff]  ;;  %v529_v58 = vld [vmem:[#allocation9 + $0x520] sm:$0xff]  ;;  %1647 = vmatpush1.bf16.msra.mxu0 %v1646_v52 }
  0x71   :  { %v1648_v57 = vpack.c.bf16 %v530_v50, %v526_v49  ;;  %v406_v59 = vld [vmem:[#allocation9 + $0x148] sm:$0xff]  ;;  %1585 = vmatprep.subr.bf16.mxu1 %v1584_v53  ;;  %v1650_v0 = vpack.c.bf16 %v529_v58, %v525_v56  ;;  %v405_v2 = vld [vmem:[#allocation9 + $0x140] sm:$0xff] }
  0x72   :  { %v410_v60 = vld [vmem:[#allocation9 + $0x168] sm:$0xff]  ;;  %v409_v3 = vld [vmem:[#allocation9 + $0x160] sm:$0xff]  ;;  %1587 = vmatpush1.bf16.msra.mxu1 %v1586_v63 }
  0x73   :  { %v534_v61 = vld [vmem:[#allocation9 + $0x548] sm:$0xff]  ;;  %v1588_v1 = vpack.c.bf16 %v410_v60, %v406_v59  ;;  %v533_v4 = vld [vmem:[#allocation9 + $0x540] sm:$0xff]  ;;  %1649 = vmatprep.subr.bf16.mxu0 %v1648_v57  ;;  %v1590_v11 = vpack.c.bf16 %v409_v3, %v405_v2 }
  0x74   :  { %v538_v62 = vld [vmem:[#allocation9 + $0x568] sm:$0xff]  ;;  %v537_v6 = vld [vmem:[#allocation9 + $0x560] sm:$0xff]  ;;  %1651 = vmatpush1.bf16.msra.mxu0 %v1650_v0 }
  0x75   :  { %v1652_v5 = vpack.c.bf16 %v538_v62, %v534_v61  ;;  %v414_v7 = vld [vmem:[#allocation9 + $0x188] sm:$0xff]  ;;  %1589 = vmatprep.subr.bf16.mxu1 %v1588_v1  ;;  %v1654_v12 = vpack.c.bf16 %v537_v6, %v533_v4  ;;  %v413_v14 = vld [vmem:[#allocation9 + $0x180] sm:$0xff] }
  0x76   :  { %v418_v8 = vld [vmem:[#allocation9 + $0x1a8] sm:$0xff]  ;;  %v417_v15 = vld [vmem:[#allocation9 + $0x1a0] sm:$0xff]  ;;  %1591 = vmatpush1.bf16.msra.mxu1 %v1590_v11 }
  0x77   :  { %v542_v9 = vld [vmem:[#allocation9 + $0x588] sm:$0xff]  ;;  %v1592_v13 = vpack.c.bf16 %v418_v8, %v414_v7  ;;  %v541_v16 = vld [vmem:[#allocation9 + $0x580] sm:$0xff]  ;;  %1653 = vmatprep.subr.bf16.mxu0 %v1652_v5  ;;  %v1594_v23 = vpack.c.bf16 %v417_v15, %v413_v14 }
  0x78   :  { %v546_v10 = vld [vmem:[#allocation9 + $0x5a8] sm:$0xff]  ;;  %v545_v18 = vld [vmem:[#allocation9 + $0x5a0] sm:$0xff]  ;;  %1655 = vmatpush1.bf16.msra.mxu0 %v1654_v12 }
  0x79   :  { %v1656_v17 = vpack.c.bf16 %v546_v10, %v542_v9  ;;  %v422_v19 = vld [vmem:[#allocation9 + $0x1c8] sm:$0xff]  ;;  %1593 = vmatprep.subr.bf16.mxu1 %v1592_v13  ;;  %v1658_v24 = vpack.c.bf16 %v545_v18, %v541_v16  ;;  %v421_v26 = vld [vmem:[#allocation9 + $0x1c0] sm:$0xff] }
  0x7a   :  { %v426_v20 = vld [vmem:[#allocation9 + $0x1e8] sm:$0xff]  ;;  %v425_v27 = vld [vmem:[#allocation9 + $0x1e0] sm:$0xff]  ;;  %1595 = vmatpush1.bf16.msra.mxu1 %v1594_v23 }
  0x7b   :  { %v550_v21 = vld [vmem:[#allocation9 + $0x5c8] sm:$0xff]  ;;  %v1596_v25 = vpack.c.bf16 %v426_v20, %v422_v19  ;;  %v549_v28 = vld [vmem:[#allocation9 + $0x5c0] sm:$0xff]  ;;  %1657 = vmatprep.subr.bf16.mxu0 %v1656_v17  ;;  %v1598_v35 = vpack.c.bf16 %v425_v27, %v421_v26  ;;  %v2518_v20 = vld [vmem:[#allocation6 + $0x18] sm:$0xff] }
  0x7c   :  { %v554_v22 = vld [vmem:[#allocation9 + $0x5e8] sm:$0xff]  ;;  %v553_v30 = vld [vmem:[#allocation9 + $0x5e0] sm:$0xff]  ;;  %1659 = vmatpush1.bf16.msra.mxu0 %v1658_v24  ;;  %756 = vmatprep.mubr.f32.mxu0 %v2518_v20 }
  0x7d   :  { %v1660_v29 = vpack.c.bf16 %v554_v22, %v550_v21  ;;  %v430_v31 = vld [vmem:[#allocation9 + $0x208] sm:$0xff]  ;;  %1597 = vmatprep.subr.bf16.mxu1 %v1596_v25  ;;  %v1662_v36 = vpack.c.bf16 %v553_v30, %v549_v28  ;;  %v429_v38 = vld [vmem:[#allocation9 + $0x200] sm:$0xff] }
  0x7e   :  { %v434_v32 = vld [vmem:[#allocation9 + $0x228] sm:$0xff]  ;;  %v433_v39 = vld [vmem:[#allocation9 + $0x220] sm:$0xff]  ;;  %1599 = vmatpush1.bf16.msra.mxu1 %v1598_v35 }
  0x7f   :  { %v558_v33 = vld [vmem:[#allocation9 + $0x608] sm:$0xff]  ;;  %v1600_v37 = vpack.c.bf16 %v434_v32, %v430_v31  ;;  %v557_v40 = vld [vmem:[#allocation9 + $0x600] sm:$0xff]  ;;  %1661 = vmatprep.subr.bf16.mxu0 %v1660_v29  ;;  %v1602_v47 = vpack.c.bf16 %v433_v39, %v429_v38 }
  0x80   :  { %v562_v34 = vld [vmem:[#allocation9 + $0x628] sm:$0xff]  ;;  %v561_v42 = vld [vmem:[#allocation9 + $0x620] sm:$0xff]  ;;  %1663 = vmatpush1.bf16.msra.mxu0 %v1662_v36 }
  0x81   :  { %v1664_v41 = vpack.c.bf16 %v562_v34, %v558_v33  ;;  %v438_v43 = vld [vmem:[#allocation9 + $0x248] sm:$0xff]  ;;  %1601 = vmatprep.subr.bf16.mxu1 %v1600_v37  ;;  %v1666_v48 = vpack.c.bf16 %v561_v42, %v557_v40  ;;  %v437_v50 = vld [vmem:[#allocation9 + $0x240] sm:$0xff] }
  0x82   :  { %v442_v44 = vld [vmem:[#allocation9 + $0x268] sm:$0xff]  ;;  %v441_v51 = vld [vmem:[#allocation9 + $0x260] sm:$0xff]  ;;  %1603 = vmatpush1.bf16.msra.mxu1 %v1602_v47 }
  0x83   :  { %v566_v45 = vld [vmem:[#allocation9 + $0x648] sm:$0xff]  ;;  %v1604_v49 = vpack.c.bf16 %v442_v44, %v438_v43  ;;  %v565_v52 = vld [vmem:[#allocation9 + $0x640] sm:$0xff]  ;;  %1665 = vmatprep.subr.bf16.mxu0 %v1664_v41  ;;  %v1606_v59 = vpack.c.bf16 %v441_v51, %v437_v50 }
  0x84   :  { %v570_v46 = vld [vmem:[#allocation9 + $0x668] sm:$0xff]  ;;  %v569_v54 = vld [vmem:[#allocation9 + $0x660] sm:$0xff]  ;;  %1667 = vmatpush1.bf16.msra.mxu0 %v1666_v48 }
  0x85   :  { %v1668_v53 = vpack.c.bf16 %v570_v46, %v566_v45  ;;  %v446_v55 = vld [vmem:[#allocation9 + $0x288] sm:$0xff]  ;;  %1605 = vmatprep.subr.bf16.mxu1 %v1604_v49  ;;  %v1670_v60 = vpack.c.bf16 %v569_v54, %v565_v52  ;;  %v445_v62 = vld [vmem:[#allocation9 + $0x280] sm:$0xff] }
  0x86   :  { %v450_v56 = vld [vmem:[#allocation9 + $0x2a8] sm:$0xff]  ;;  %v449_v63 = vld [vmem:[#allocation9 + $0x2a0] sm:$0xff]  ;;  %1607 = vmatpush1.bf16.msra.mxu1 %v1606_v59 }
  0x87   :  { %v574_v57 = vld [vmem:[#allocation9 + $0x688] sm:$0xff]  ;;  %v1608_v61 = vpack.c.bf16 %v450_v56, %v446_v55  ;;  %v573_v0 = vld [vmem:[#allocation9 + $0x680] sm:$0xff]  ;;  %1669 = vmatprep.subr.bf16.mxu0 %v1668_v53  ;;  %v1610_v7 = vpack.c.bf16 %v449_v63, %v445_v62 }
  0x88   :  { %v578_v58 = vld [vmem:[#allocation9 + $0x6a8] sm:$0xff]  ;;  %v577_v2 = vld [vmem:[#allocation9 + $0x6a0] sm:$0xff]  ;;  %1671 = vmatpush1.bf16.msra.mxu0 %v1670_v60 }
  0x89   :  { %v1672_v1 = vpack.c.bf16 %v578_v58, %v574_v57  ;;  %v454_v3 = vld [vmem:[#allocation9 + $0x2c8] sm:$0xff]  ;;  %v453_v8 = vld [vmem:[#allocation9 + $0x2c0] sm:$0xff]  ;;  %1609 = vmatprep.subr.bf16.mxu1 %v1608_v61  ;;  %v1674_v9 = vpack.c.bf16 %v577_v2, %v573_v0  ;;  %v372_v2 = vld [vmem:[#allocation9 + $0x38] sm:$0xff] }
  0x8a   :  { %v458_v4 = vld [vmem:[#allocation9 + $0x2e8] sm:$0xff]  ;;  %v457_v11 = vld [vmem:[#allocation9 + $0x2e0] sm:$0xff]  ;;  %1611 = vmatpush1.bf16.msra.mxu1 %v1610_v7 }
  0x8b   :  { %v582_v5 = vld [vmem:[#allocation9 + $0x6c8] sm:$0xff]  ;;  %v1612_v10 = vpack.c.bf16 %v458_v4, %v454_v3  ;;  %v581_v12 = vld [vmem:[#allocation9 + $0x6c0] sm:$0xff]  ;;  %1673 = vmatprep.subr.bf16.mxu0 %v1672_v1  ;;  %v1614_v21 = vpack.c.bf16 %v457_v11, %v453_v8  ;;  %v368_v1 = vld [vmem:[#allocation9 + $0x18] sm:$0xff] }
  0x8c   :  { %v586_v6 = vld [vmem:[#allocation9 + $0x6e8] sm:$0xff]  ;;  %v585_v13 = vld [vmem:[#allocation9 + $0x6e0] sm:$0xff]  ;;  %1675 = vmatpush1.bf16.msra.mxu0 %v1674_v9  ;;  %v1696_v7 = vpack.c.bf16 %v372_v2, %v368_v1  ;;  %v367_v8 = vld [vmem:[#allocation9 + $0x10] sm:$0xff] }
  0x8d   :  { %v1676_v14 = vpack.c.bf16 %v586_v6, %v582_v5  ;;  %v462_v15 = vld [vmem:[#allocation9 + $0x308] sm:$0xff]  ;;  %1613 = vmatprep.subr.bf16.mxu1 %v1612_v10  ;;  %v1678_v22 = vpack.c.bf16 %v585_v13, %v581_v12  ;;  %v461_v24 = vld [vmem:[#allocation9 + $0x300] sm:$0xff]  ;;  %v371_v9 = vld [vmem:[#allocation9 + $0x30] sm:$0xff] }
  0x8e   :  { %v466_v16 = vld [vmem:[#allocation9 + $0x328] sm:$0xff]  ;;  %v465_v25 = vld [vmem:[#allocation9 + $0x320] sm:$0xff]  ;;  %1615 = vmatpush1.bf16.msra.mxu1 %v1614_v21  ;;  %v376_v13 = vld [vmem:[#allocation9 + $0x58] sm:$0xff]  ;;  %v1698_v21 = vpack.c.bf16 %v371_v9, %v367_v8 }
  0x8f   :  { %v2515_v17 = vld [vmem:[#allocation6 + $0x8] sm:$0xff]  ;;  %v1616_v23 = vpack.c.bf16 %v466_v16, %v462_v15  ;;  %v589_v26 = vld [vmem:[#allocation9 + $0x700] sm:$0xff]  ;;  %1677 = vmatprep.subr.bf16.mxu0 %v1676_v14  ;;  %v1618_v33 = vpack.c.bf16 %v465_v25, %v461_v24  ;;  %v380_v14 = vld [vmem:[#allocation9 + $0x78] sm:$0xff] }
  0x90   :  { %v590_v18 = vld [vmem:[#allocation9 + $0x708] sm:$0xff]  ;;  %685 = vmatprep.mubr.f32.mxu1 %v2515_v17  ;;  %v593_v28 = vld [vmem:[#allocation9 + $0x720] sm:$0xff]  ;;  %1679 = vmatpush1.bf16.msra.mxu0 %v1678_v22  ;;  %v375_v24 = vld [vmem:[#allocation9 + $0x50] sm:$0xff] }
  0x91   :  { %v594_v19 = vld [vmem:[#allocation9 + $0x728] sm:$0xff]  ;;  %1617 = vmatprep.subr.bf16.mxu1 %v1616_v23  ;;  %v1682_v34 = vpack.c.bf16 %v593_v28, %v589_v26  ;;  %v469_v36 = vld [vmem:[#allocation9 + $0x340] sm:$0xff]  ;;  %v1700_v23 = vpack.c.bf16 %v380_v14, %v376_v13  ;;  %v379_v25 = vld [vmem:[#allocation9 + $0x70] sm:$0xff] }
  0x92   :  { %v1680_v27 = vpack.c.bf16 %v594_v19, %v590_v18  ;;  %v470_v29 = vld [vmem:[#allocation9 + $0x348] sm:$0xff]  ;;  %v473_v37 = vld [vmem:[#allocation9 + $0x360] sm:$0xff]  ;;  %1619 = vmatpush1.bf16.msra.mxu1 %v1618_v33  ;;  %v107_v19 = vld [vmem:[#allocation6 + $0x10] sm:$0xff]  ;;  %v1702_v33 = vpack.c.bf16 %v379_v25, %v375_v24 }
  0x93   :  { %v474_v30 = vld [vmem:[#allocation9 + $0x368] sm:$0xff]  ;;  %v597_v38 = vld [vmem:[#allocation9 + $0x740] sm:$0xff]  ;;  %v1622_v45 = vpack.c.bf16 %v473_v37, %v469_v36  ;;  %v383_v36 = vld [vmem:[#allocation9 + $0x90] sm:$0xff] }
  0x94   :  { %v598_v31 = vld [vmem:[#allocation9 + $0x748] sm:$0xff]  ;;  %v1620_v35 = vpack.c.bf16 %v474_v30, %v470_v29  ;;  %1681 = vmatprep.subr.bf16.mxu0 %v1680_v27  ;;  %v601_v40 = vld [vmem:[#allocation9 + $0x760] sm:$0xff]  ;;  %v384_v29 = vld [vmem:[#allocation9 + $0x98] sm:$0xff] }
  0x95   :  { %v602_v32 = vld [vmem:[#allocation9 + $0x768] sm:$0xff]  ;;  %1683 = vmatpush1.bf16.msra.mxu0 %v1682_v34  ;;  %v1686_v46 = vpack.c.bf16 %v601_v40, %v597_v38  ;;  %v477_v48 = vld [vmem:[#allocation9 + $0x380] sm:$0xff]  ;;  %v388_v30 = vld [vmem:[#allocation9 + $0xb8] sm:$0xff] }
  0x96   :  { %v1684_v39 = vpack.c.bf16 %v602_v32, %v598_v31  ;;  %v478_v41 = vld [vmem:[#allocation9 + $0x388] sm:$0xff]  ;;  %1621 = vmatprep.subr.bf16.mxu1 %v1620_v35  ;;  %v481_v49 = vld [vmem:[#allocation9 + $0x3a0] sm:$0xff]  ;;  %v1704_v35 = vpack.c.bf16 %v388_v30, %v384_v29  ;;  %v387_v37 = vld [vmem:[#allocation9 + $0xb0] sm:$0xff] }
  0x97   :  { %v482_v42 = vld [vmem:[#allocation9 + $0x3a8] sm:$0xff]  ;;  %v605_v50 = vld [vmem:[#allocation9 + $0x780] sm:$0xff]  ;;  %1623 = vmatpush1.bf16.msra.mxu1 %v1622_v45  ;;  %v1626_v57 = vpack.c.bf16 %v481_v49, %v477_v48  ;;  %v1706_v45 = vpack.c.bf16 %v387_v37, %v383_v36  ;;  %v391_v48 = vld [vmem:[#allocation9 + $0xd0] sm:$0xff] }
  0x98   :  { %v606_v43 = vld [vmem:[#allocation9 + $0x788] sm:$0xff]  ;;  %v1624_v47 = vpack.c.bf16 %v482_v42, %v478_v41  ;;  %1685 = vmatprep.subr.bf16.mxu0 %v1684_v39  ;;  %v609_v52 = vld [vmem:[#allocation9 + $0x7a0] sm:$0xff]  ;;  %v392_v41 = vld [vmem:[#allocation9 + $0xd8] sm:$0xff] }
  0x99   :  { %v610_v44 = vld [vmem:[#allocation9 + $0x7a8] sm:$0xff]  ;;  %1687 = vmatpush1.bf16.msra.mxu0 %v1686_v46  ;;  %v1690_v58 = vpack.c.bf16 %v609_v52, %v605_v50  ;;  %v485_v60 = vld [vmem:[#allocation9 + $0x3c0] sm:$0xff]  ;;  %v396_v42 = vld [vmem:[#allocation9 + $0xf8] sm:$0xff] }
  0x9a   :  { %v1688_v51 = vpack.c.bf16 %v610_v44, %v606_v43  ;;  %v486_v53 = vld [vmem:[#allocation9 + $0x3c8] sm:$0xff]  ;;  %1625 = vmatprep.subr.bf16.mxu1 %v1624_v47  ;;  %v489_v61 = vld [vmem:[#allocation9 + $0x3e0] sm:$0xff]  ;;  %v1708_v47 = vpack.c.bf16 %v396_v42, %v392_v41  ;;  %v395_v49 = vld [vmem:[#allocation9 + $0xf0] sm:$0xff] }
  0x9b   :  { %v490_v54 = vld [vmem:[#allocation9 + $0x3e8] sm:$0xff]  ;;  %v613_v62 = vld [vmem:[#allocation9 + $0x7c0] sm:$0xff]  ;;  %1627 = vmatpush1.bf16.msra.mxu1 %v1626_v57  ;;  %v1630_v5 = vpack.c.bf16 %v489_v61, %v485_v60  ;;  %v403_v60 = vld [vmem:[#allocation9 + $0x130] sm:$0xff] }
  0x9c   :  { %v614_v55 = vld [vmem:[#allocation9 + $0x7c8] sm:$0xff]  ;;  %v1628_v59 = vpack.c.bf16 %v490_v54, %v486_v53  ;;  %1689 = vmatprep.subr.bf16.mxu0 %v1688_v51  ;;  %v617_v0 = vld [vmem:[#allocation9 + $0x7e0] sm:$0xff]  ;;  %v400_v53 = vld [vmem:[#allocation9 + $0x118] sm:$0xff] }
  0x9d   :  { %v618_v56 = vld [vmem:[#allocation9 + $0x7e8] sm:$0xff]  ;;  %1691 = vmatpush1.bf16.msra.mxu0 %v1690_v58  ;;  %v1694_v6 = vpack.c.bf16 %v617_v0, %v613_v62  ;;  %v109_v10 = vld [vmem:[#allocation8] sm:$0xff]  ;;  %v404_v54 = vld [vmem:[#allocation9 + $0x138] sm:$0xff] }
  0x9e   :  { %v1692_v63 = vpack.c.bf16 %v618_v56, %v614_v55  ;;  %v110_v3 = vld [vmem:[#allocation8 + $0x8] sm:$0xff]  ;;  %1629 = vmatprep.subr.bf16.mxu1 %v1628_v59  ;;  %v113_v12 = vld [vmem:[#allocation8 + $0x20] sm:$0xff]  ;;  %v1712_v58 = vpack.c.bf16 %v404_v54, %v400_v53  ;;  %v399_v59 = vld [vmem:[#allocation9 + $0x110] sm:$0xff] }
  0x9f   :  { %v114_v4 = vld [vmem:[#allocation8 + $0x28] sm:$0xff]  ;;  %1631 = vmatpush1.bf16.msra.mxu1 %v1630_v5  ;;  %v2521_v18 = vld [vmem:[#allocation6] sm:$0xff]  ;;  %v1826_v22 = vpack.c.bf16 %v113_v12, %v109_v10  ;;  %v408_v0 = vld [vmem:[#allocation9 + $0x158] sm:$0xff] }
  0xa0   :  { %1693 = vmatprep.subr.bf16.mxu0 %v1692_v63  ;;  %v1824_v11 = vpack.c.bf16 %v114_v4, %v110_v3  ;;  %v118_v15 = vld [vmem:[#allocation8 + $0x48] sm:$0xff]  ;;  %1697 = vmatprep.subr.bf16.mxu1 %v1696_v7  ;;  %v117_v26 = vld [vmem:[#allocation8 + $0x40] sm:$0xff]  ;;  %v412_v1 = vld [vmem:[#allocation9 + $0x178] sm:$0xff]  ;;  %v1714_v4 = vpack.c.bf16 %v403_v60, %v399_v59 }
  0xa1   :  { %v122_v16 = vld [vmem:[#allocation8 + $0x68] sm:$0xff]  ;;  %1695 = vmatpush1.bf16.msra.mxu0 %v1694_v6  ;;  %v121_v28 = vld [vmem:[#allocation8 + $0x60] sm:$0xff]  ;;  %v1716_v6 = vpack.c.bf16 %v412_v1, %v408_v0  ;;  %v407_v7 = vld [vmem:[#allocation9 + $0x150] sm:$0xff] }
  0xa2   :  { %1825 = vmatprep.subr.bf16.mxu0 %v1824_v11  ;;  %v1828_v27 = vpack.c.bf16 %v122_v16, %v118_v15  ;;  %686 = vmatmul.mubr.f32.vlgmr.msra.gmra.mrb[0].mxu1 %v2521_v18  ;;  %v126_v31 = vld [vmem:[#allocation8 + $0x88] sm:$0xff]  ;;  %v1830_v34 = vpack.c.bf16 %v121_v28, %v117_v26  ;;  %v125_v38 = vld [vmem:[#allocation8 + $0x80] sm:$0xff]  ;;  %v411_v8 = vld [vmem:[#allocation9 + $0x170] sm:$0xff] }
  0xa3   :  { %v130_v32 = vld [vmem:[#allocation8 + $0xa8] sm:$0xff]  ;;  %1699 = vmatpush1.bf16.msra.mxu1 %v1698_v21  ;;  %v129_v40 = vld [vmem:[#allocation8 + $0xa0] sm:$0xff]  ;;  %827 = vmatprep.mubr.f32.mxu1 %v2515_v17  ;;  %v1710_v17 = vpack.c.bf16 %v395_v49, %v391_v48  ;;  %v416_v12 = vld [vmem:[#allocation9 + $0x198] sm:$0xff]  ;;  %v1718_v16 = vpack.c.bf16 %v411_v8, %v407_v7 }
  0xa4   :  { %757 = vmatmul.mubr.f32.vlgmr.msra.gmra.mrb[0].mxu0 %v107_v19  ;;  %1701 = vmatprep.subr.bf16.mxu1 %v1700_v23  ;;  %v1832_v39 = vpack.c.bf16 %v130_v32, %v126_v31  ;;  %v134_v43 = vld [vmem:[#allocation8 + $0xc8] sm:$0xff]  ;;  %v1834_v46 = vpack.c.bf16 %v129_v40, %v125_v38  ;;  %v133_v50 = vld [vmem:[#allocation8 + $0xc0] sm:$0xff]  ;;  %v420_v13 = vld [vmem:[#allocation9 + $0x1b8] sm:$0xff] }
  0xa5   :  { %1827 = vmatpush1.bf16.msra.mxu0 %v1826_v22  ;;  %v138_v44 = vld [vmem:[#allocation8 + $0xe8] sm:$0xff]  ;;  %v137_v52 = vld [vmem:[#allocation8 + $0xe0] sm:$0xff]  ;;  %v1720_v21 = vpack.c.bf16 %v420_v13, %v416_v12  ;;  %v415_v22 = vld [vmem:[#allocation9 + $0x190] sm:$0xff] }
  0xa6   :  { %1829 = vmatprep.subr.bf16.mxu0 %v1828_v27  ;;  %v1836_v51 = vpack.c.bf16 %v138_v44, %v134_v43  ;;  %v142_v55 = vld [vmem:[#allocation8 + $0x108] sm:$0xff]  ;;  %v1838_v57 = vpack.c.bf16 %v137_v52, %v133_v50  ;;  %v141_v61 = vld [vmem:[#allocation8 + $0x100] sm:$0xff]  ;;  %v419_v23 = vld [vmem:[#allocation9 + $0x1b0] sm:$0xff] }
  0xa7   :  { %1703 = vmatpush1.bf16.msra.mxu1 %v1702_v33  ;;  %v146_v56 = vld [vmem:[#allocation8 + $0x128] sm:$0xff]  ;;  %v145_v63 = vld [vmem:[#allocation8 + $0x120] sm:$0xff]  ;;  %v424_v27 = vld [vmem:[#allocation9 + $0x1d8] sm:$0xff]  ;;  %v1722_v32 = vpack.c.bf16 %v419_v23, %v415_v22 }
  0xa8   :  { %1705 = vmatprep.subr.bf16.mxu1 %v1704_v35  ;;  %v1840_v62 = vpack.c.bf16 %v146_v56, %v142_v55  ;;  %v150_v2 = vld [vmem:[#allocation8 + $0x148] sm:$0xff]  ;;  %v1842_v5 = vpack.c.bf16 %v145_v63, %v141_v61  ;;  %v149_v9 = vld [vmem:[#allocation8 + $0x140] sm:$0xff]  ;;  %v428_v28 = vld [vmem:[#allocation9 + $0x1f8] sm:$0xff] }
  0xa9   :  { %1831 = vmatpush1.bf16.msra.mxu0 %v1830_v34  ;;  %v154_v3 = vld [vmem:[#allocation8 + $0x168] sm:$0xff]  ;;  %v153_v11 = vld [vmem:[#allocation8 + $0x160] sm:$0xff]  ;;  %v1724_v34 = vpack.c.bf16 %v428_v28, %v424_v27  ;;  %v423_v35 = vld [vmem:[#allocation9 + $0x1d0] sm:$0xff] }
  0xaa   :  { %1833 = vmatprep.subr.bf16.mxu0 %v1832_v39  ;;  %v1844_v10 = vpack.c.bf16 %v154_v3, %v150_v2  ;;  %v158_v14 = vld [vmem:[#allocation8 + $0x188] sm:$0xff]  ;;  %v1846_v19 = vpack.c.bf16 %v153_v11, %v149_v9  ;;  %v157_v24 = vld [vmem:[#allocation8 + $0x180] sm:$0xff]  ;;  %v427_v36 = vld [vmem:[#allocation9 + $0x1f0] sm:$0xff] }
  0xab   :  { %1707 = vmatpush1.bf16.msra.mxu1 %v1706_v45  ;;  %v162_v15 = vld [vmem:[#allocation8 + $0x1a8] sm:$0xff]  ;;  %v161_v26 = vld [vmem:[#allocation8 + $0x1a0] sm:$0xff]  ;;  %v432_v40 = vld [vmem:[#allocation9 + $0x218] sm:$0xff]  ;;  %v1726_v44 = vpack.c.bf16 %v427_v36, %v423_v35 }
  0xac   :  { %1709 = vmatprep.subr.bf16.mxu1 %v1708_v47  ;;  %v1848_v25 = vpack.c.bf16 %v162_v15, %v158_v14  ;;  %v166_v29 = vld [vmem:[#allocation8 + $0x1c8] sm:$0xff]  ;;  %v1850_v33 = vpack.c.bf16 %v161_v26, %v157_v24  ;;  %v165_v37 = vld [vmem:[#allocation8 + $0x1c0] sm:$0xff]  ;;  %v436_v41 = vld [vmem:[#allocation9 + $0x238] sm:$0xff] }
  0xad   :  { %1835 = vmatpush1.bf16.msra.mxu0 %v1834_v46  ;;  %v170_v30 = vld [vmem:[#allocation8 + $0x1e8] sm:$0xff]  ;;  %v169_v39 = vld [vmem:[#allocation8 + $0x1e0] sm:$0xff]  ;;  %v1728_v46 = vpack.c.bf16 %v436_v41, %v432_v40  ;;  %v431_v47 = vld [vmem:[#allocation9 + $0x210] sm:$0xff] }
  0xae   :  { %1837 = vmatprep.subr.bf16.mxu0 %v1836_v51  ;;  %v2525_v31 = vld [vmem:[#allocation3 + $0x8] sm:$0xff]  ;;  %v1852_v38 = vpack.c.bf16 %v170_v30, %v166_v29  ;;  %v1854_v45 = vpack.c.bf16 %v169_v39, %v165_v37  ;;  %v435_v48 = vld [vmem:[#allocation9 + $0x230] sm:$0xff]  ;;  %v173_v49 = vld [vmem:[#allocation8 + $0x200] sm:$0xff] }
  0xaf   :  { %1711 = vmatpush1.bf16.msra.mxu1 %v1710_v17  ;;  %969 = vmatprep.mubr.f32.mxu0 %v2525_v31  ;;  %v174_v42 = vld [vmem:[#allocation8 + $0x208] sm:$0xff]  ;;  %v177_v51 = vld [vmem:[#allocation8 + $0x220] sm:$0xff]  ;;  %v440_v52 = vld [vmem:[#allocation9 + $0x258] sm:$0xff]  ;;  %v1730_v56 = vpack.c.bf16 %v435_v48, %v431_v47 }
  0xb0   :  { %1713 = vmatprep.subr.bf16.mxu1 %v1712_v58  ;;  %v178_v43 = vld [vmem:[#allocation8 + $0x228] sm:$0xff]  ;;  %v444_v53 = vld [vmem:[#allocation9 + $0x278] sm:$0xff]  ;;  %v1858_v17 = vpack.c.bf16 %v177_v51, %v173_v49  ;;  %v439_v58 = vld [vmem:[#allocation9 + $0x250] sm:$0xff] }
  0xb1   :  { %1839 = vmatpush1.bf16.msra.mxu0 %v1838_v57  ;;  %v1856_v50 = vpack.c.bf16 %v178_v43, %v174_v42  ;;  %v182_v54 = vld [vmem:[#allocation8 + $0x248] sm:$0xff]  ;;  %v1732_v57 = vpack.c.bf16 %v444_v53, %v440_v52  ;;  %v443_v59 = vld [vmem:[#allocation9 + $0x270] sm:$0xff]  ;;  %v181_v60 = vld [vmem:[#allocation8 + $0x240] sm:$0xff] }
  0xb2   :  { %1841 = vmatprep.subr.bf16.mxu0 %v1840_v62  ;;  %v186_v55 = vld [vmem:[#allocation8 + $0x268] sm:$0xff]  ;;  %v185_v62 = vld [vmem:[#allocation8 + $0x260] sm:$0xff]  ;;  %v448_v63 = vld [vmem:[#allocation9 + $0x298] sm:$0xff]  ;;  %v1734_v3 = vpack.c.bf16 %v443_v59, %v439_v58 }
  0xb3   :  { %1715 = vmatpush1.bf16.msra.mxu1 %v1714_v4  ;;  %v1860_v61 = vpack.c.bf16 %v186_v55, %v182_v54  ;;  %v452_v0 = vld [vmem:[#allocation9 + $0x2b8] sm:$0xff]  ;;  %v190_v1 = vld [vmem:[#allocation8 + $0x288] sm:$0xff]  ;;  %v1862_v4 = vpack.c.bf16 %v185_v62, %v181_v60  ;;  %v451_v7 = vld [vmem:[#allocation9 + $0x2b0] sm:$0xff] }
  0xb4   :  { %1717 = vmatprep.subr.bf16.mxu1 %v1716_v6  ;;  %v194_v2 = vld [vmem:[#allocation8 + $0x2a8] sm:$0xff]  ;;  %v447_v6 = vld [vmem:[#allocation9 + $0x290] sm:$0xff]  ;;  %v189_v8 = vld [vmem:[#allocation8 + $0x280] sm:$0xff] }
  0xb5   :  { %1843 = vmatpush1.bf16.msra.mxu0 %v1842_v5  ;;  %v1736_v5 = vpack.c.bf16 %v452_v0, %v448_v63  ;;  %v1864_v9 = vpack.c.bf16 %v194_v2, %v190_v1  ;;  %v456_v11 = vld [vmem:[#allocation9 + $0x2d8] sm:$0xff]  ;;  %v198_v13 = vld [vmem:[#allocation8 + $0x2c8] sm:$0xff]  ;;  %v1738_v15 = vpack.c.bf16 %v451_v7, %v447_v6  ;;  %v459_v22 = vld [vmem:[#allocation9 + $0x2f0] sm:$0xff] }
  0xb6   :  { %1845 = vmatprep.subr.bf16.mxu0 %v1844_v10  ;;  %v193_v10 = vld [vmem:[#allocation8 + $0x2a0] sm:$0xff]  ;;  %v460_v12 = vld [vmem:[#allocation9 + $0x2f8] sm:$0xff]  ;;  %v202_v14 = vld [vmem:[#allocation8 + $0x2e8] sm:$0xff] }
  0xb7   :  { %1719 = vmatpush1.bf16.msra.mxu1 %v1718_v16  ;;  %v1866_v16 = vpack.c.bf16 %v193_v10, %v189_v8  ;;  %v197_v23 = vld [vmem:[#allocation8 + $0x2c0] sm:$0xff]  ;;  %v1868_v24 = vpack.c.bf16 %v202_v14, %v198_v13  ;;  %v464_v26 = vld [vmem:[#allocation9 + $0x318] sm:$0xff]  ;;  %v206_v28 = vld [vmem:[#allocation8 + $0x308] sm:$0xff] }
  0xb8   :  { %1721 = vmatprep.subr.bf16.mxu1 %v1720_v21  ;;  %v455_v21 = vld [vmem:[#allocation9 + $0x2d0] sm:$0xff]  ;;  %v468_v27 = vld [vmem:[#allocation9 + $0x338] sm:$0xff]  ;;  %v210_v29 = vld [vmem:[#allocation8 + $0x328] sm:$0xff] }
  0xb9   :  { %1847 = vmatpush1.bf16.msra.mxu0 %v1846_v19  ;;  %v1740_v19 = vpack.c.bf16 %v460_v12, %v456_v11  ;;  %v1742_v30 = vpack.c.bf16 %v459_v22, %v455_v21  ;;  %v467_v35 = vld [vmem:[#allocation9 + $0x330] sm:$0xff]  ;;  %v205_v36 = vld [vmem:[#allocation8 + $0x300] sm:$0xff]  ;;  %v1872_v37 = vpack.c.bf16 %v210_v29, %v206_v28  ;;  %v472_v39 = vld [vmem:[#allocation9 + $0x358] sm:$0xff] }
  0xba   :  { %1849 = vmatprep.subr.bf16.mxu0 %v1848_v25  ;;  %v201_v25 = vld [vmem:[#allocation8 + $0x2e0] sm:$0xff]  ;;  %v476_v40 = vld [vmem:[#allocation9 + $0x378] sm:$0xff]  ;;  %v214_v41 = vld [vmem:[#allocation8 + $0x348] sm:$0xff] }
  0xbb   :  { %1723 = vmatpush1.bf16.msra.mxu1 %v1722_v32  ;;  %v1870_v32 = vpack.c.bf16 %v201_v25, %v197_v23  ;;  %v218_v42 = vld [vmem:[#allocation8 + $0x368] sm:$0xff]  ;;  %v475_v47 = vld [vmem:[#allocation9 + $0x370] sm:$0xff]  ;;  %v213_v48 = vld [vmem:[#allocation8 + $0x340] sm:$0xff] }
  0xbc   :  { %1725 = vmatprep.subr.bf16.mxu1 %v1724_v34  ;;  %v463_v34 = vld [vmem:[#allocation9 + $0x310] sm:$0xff]  ;;  %v1876_v49 = vpack.c.bf16 %v218_v42, %v214_v41  ;;  %v480_v51 = vld [vmem:[#allocation9 + $0x398] sm:$0xff]  ;;  %v222_v53 = vld [vmem:[#allocation8 + $0x388] sm:$0xff] }
  0xbd   :  { %1851 = vmatpush1.bf16.msra.mxu0 %v1850_v33  ;;  %v1744_v33 = vpack.c.bf16 %v468_v27, %v464_v26  ;;  %v1746_v43 = vpack.c.bf16 %v467_v35, %v463_v34  ;;  %v484_v52 = vld [vmem:[#allocation9 + $0x3b8] sm:$0xff]  ;;  %v226_v54 = vld [vmem:[#allocation8 + $0x3a8] sm:$0xff]  ;;  %v483_v58 = vld [vmem:[#allocation9 + $0x3b0] sm:$0xff] }
  0xbe   :  { %1853 = vmatprep.subr.bf16.mxu0 %v1852_v38  ;;  %v209_v38 = vld [vmem:[#allocation8 + $0x320] sm:$0xff]  ;;  %v1880_v60 = vpack.c.bf16 %v226_v54, %v222_v53  ;;  %v488_v62 = vld [vmem:[#allocation9 + $0x3d8] sm:$0xff]  ;;  %v230_v0 = vld [vmem:[#allocation8 + $0x3c8] sm:$0xff] }
  0xbf   :  { %1727 = vmatpush1.bf16.msra.mxu1 %v1726_v44  ;;  %v1874_v44 = vpack.c.bf16 %v209_v38, %v205_v36  ;;  %v221_v59 = vld [vmem:[#allocation8 + $0x380] sm:$0xff]  ;;  %v492_v63 = vld [vmem:[#allocation9 + $0x3f8] sm:$0xff]  ;;  %v234_v1 = vld [vmem:[#allocation8 + $0x3e8] sm:$0xff] }
  0xc0   :  { %1729 = vmatprep.subr.bf16.mxu1 %v1728_v46  ;;  %v471_v46 = vld [vmem:[#allocation9 + $0x350] sm:$0xff]  ;;  %v229_v7 = vld [vmem:[#allocation8 + $0x3c0] sm:$0xff]  ;;  %v1884_v8 = vpack.c.bf16 %v234_v1, %v230_v0  ;;  %v496_v10 = vld [vmem:[#allocation9 + $0x418] sm:$0xff] }
  0xc1   :  { %1855 = vmatpush1.bf16.msra.mxu0 %v1854_v45  ;;  %v1748_v45 = vpack.c.bf16 %v476_v40, %v472_v39  ;;  %v1750_v55 = vpack.c.bf16 %v475_v47, %v471_v46  ;;  %v491_v6 = vld [vmem:[#allocation9 + $0x3f0] sm:$0xff]  ;;  %v500_v11 = vld [vmem:[#allocation9 + $0x438] sm:$0xff]  ;;  %v238_v12 = vld [vmem:[#allocation8 + $0x408] sm:$0xff] }
  0xc2   :  { %1857 = vmatprep.subr.bf16.mxu0 %v1856_v50  ;;  %v217_v50 = vld [vmem:[#allocation8 + $0x360] sm:$0xff]  ;;  %v242_v13 = vld [vmem:[#allocation8 + $0x428] sm:$0xff]  ;;  %v499_v21 = vld [vmem:[#allocation9 + $0x430] sm:$0xff] }
  0xc3   :  { %1731 = vmatpush1.bf16.msra.mxu1 %v1730_v56  ;;  %v1878_v56 = vpack.c.bf16 %v217_v50, %v213_v48  ;;  %v237_v22 = vld [vmem:[#allocation8 + $0x400] sm:$0xff]  ;;  %v1888_v23 = vpack.c.bf16 %v242_v13, %v238_v12  ;;  %v504_v25 = vld [vmem:[#allocation9 + $0x458] sm:$0xff]  ;;  %v246_v27 = vld [vmem:[#allocation8 + $0x448] sm:$0xff] }
  0xc4   :  { %1733 = vmatprep.subr.bf16.mxu1 %v1732_v57  ;;  %v479_v57 = vld [vmem:[#allocation9 + $0x390] sm:$0xff]  ;;  %v508_v26 = vld [vmem:[#allocation9 + $0x478] sm:$0xff]  ;;  %v250_v28 = vld [vmem:[#allocation8 + $0x468] sm:$0xff] }
  0xc5   :  { %1859 = vmatpush1.bf16.msra.mxu0 %v1858_v17  ;;  %v1752_v17 = vpack.c.bf16 %v484_v52, %v480_v51  ;;  %v1754_v2 = vpack.c.bf16 %v483_v58, %v479_v57  ;;  %v503_v34 = vld [vmem:[#allocation9 + $0x450] sm:$0xff]  ;;  %v245_v36 = vld [vmem:[#allocation8 + $0x440] sm:$0xff]  ;;  %v512_v39 = vld [vmem:[#allocation9 + $0x498] sm:$0xff] }
  0xc6   :  { %1861 = vmatprep.subr.bf16.mxu0 %v1860_v61  ;;  %v225_v61 = vld [vmem:[#allocation8 + $0x3a0] sm:$0xff]  ;;  %v507_v35 = vld [vmem:[#allocation9 + $0x470] sm:$0xff]  ;;  %v516_v40 = vld [vmem:[#allocation9 + $0x4b8] sm:$0xff] }
  0xc7   :  { %1735 = vmatpush1.bf16.msra.mxu1 %v1734_v3  ;;  %v1882_v3 = vpack.c.bf16 %v225_v61, %v221_v59  ;;  %v249_v38 = vld [vmem:[#allocation8 + $0x460] sm:$0xff]  ;;  %v254_v41 = vld [vmem:[#allocation8 + $0x488] sm:$0xff]  ;;  %v1768_v46 = vpack.c.bf16 %v516_v40, %v512_v39  ;;  %v511_v47 = vld [vmem:[#allocation9 + $0x490] sm:$0xff] }
  0xc8   :  { %1737 = vmatprep.subr.bf16.mxu1 %v1736_v5  ;;  %v487_v5 = vld [vmem:[#allocation9 + $0x3d0] sm:$0xff]  ;;  %v258_v42 = vld [vmem:[#allocation8 + $0x4a8] sm:$0xff]  ;;  %v257_v51 = vld [vmem:[#allocation8 + $0x4a0] sm:$0xff] }
  0xc9   :  { %1863 = vmatpush1.bf16.msra.mxu0 %v1862_v4  ;;  %v1756_v4 = vpack.c.bf16 %v492_v63, %v488_v62  ;;  %v1758_v14 = vpack.c.bf16 %v491_v6, %v487_v5  ;;  %v515_v48 = vld [vmem:[#allocation9 + $0x4b0] sm:$0xff]  ;;  %v1896_v50 = vpack.c.bf16 %v258_v42, %v254_v41  ;;  %v520_v52 = vld [vmem:[#allocation9 + $0x4d8] sm:$0xff]  ;;  %v262_v53 = vld [vmem:[#allocation8 + $0x4c8] sm:$0xff] }
  0xca   :  { %1865 = vmatprep.subr.bf16.mxu0 %v1864_v9  ;;  %v233_v9 = vld [vmem:[#allocation8 + $0x3e0] sm:$0xff]  ;;  %v266_v54 = vld [vmem:[#allocation8 + $0x4e8] sm:$0xff]  ;;  %v519_v57 = vld [vmem:[#allocation9 + $0x4d0] sm:$0xff] }
  0xcb   :  { %1739 = vmatpush1.bf16.msra.mxu1 %v1738_v15  ;;  %v1886_v15 = vpack.c.bf16 %v233_v9, %v229_v7  ;;  %v523_v58 = vld [vmem:[#allocation9 + $0x4f0] sm:$0xff]  ;;  %v261_v59 = vld [vmem:[#allocation8 + $0x4c0] sm:$0xff]  ;;  %v528_v62 = vld [vmem:[#allocation9 + $0x518] sm:$0xff] }
  0xcc   :  { %1741 = vmatprep.subr.bf16.mxu1 %v1740_v19  ;;  %v495_v19 = vld [vmem:[#allocation9 + $0x410] sm:$0xff]  ;;  %v265_v61 = vld [vmem:[#allocation8 + $0x4e0] sm:$0xff]  ;;  %v532_v63 = vld [vmem:[#allocation9 + $0x538] sm:$0xff] }
  0xcd   :  { %1867 = vmatpush1.bf16.msra.mxu0 %v1866_v16  ;;  %v1760_v16 = vpack.c.bf16 %v500_v11, %v496_v10  ;;  %v1762_v29 = vpack.c.bf16 %v499_v21, %v495_v19  ;;  %v270_v0 = vld [vmem:[#allocation8 + $0x508] sm:$0xff]  ;;  %v531_v5 = vld [vmem:[#allocation9 + $0x530] sm:$0xff]  ;;  %v269_v6 = vld [vmem:[#allocation8 + $0x500] sm:$0xff] }
  0xce   :  { %1869 = vmatprep.subr.bf16.mxu0 %v1868_v24  ;;  %v241_v24 = vld [vmem:[#allocation8 + $0x420] sm:$0xff]  ;;  %v274_v1 = vld [vmem:[#allocation8 + $0x528] sm:$0xff]  ;;  %v536_v9 = vld [vmem:[#allocation9 + $0x558] sm:$0xff] }
  0xcf   :  { %1743 = vmatpush1.bf16.msra.mxu1 %v1742_v30  ;;  %v2528_v30 = vld [vmem:[#allocation3] sm:$0xff]  ;;  %v1904_v7 = vpack.c.bf16 %v274_v1, %v270_v0  ;;  %v540_v10 = vld [vmem:[#allocation9 + $0x578] sm:$0xff]  ;;  %v278_v11 = vld [vmem:[#allocation8 + $0x548] sm:$0xff] }
  0xd0   :  { %1745 = vmatprep.subr.bf16.mxu1 %v1744_v33  ;;  %v1764_v33 = vpack.c.bf16 %v508_v26, %v504_v25  ;;  %v282_v12 = vld [vmem:[#allocation8 + $0x568] sm:$0xff]  ;;  %v539_v19 = vld [vmem:[#allocation9 + $0x570] sm:$0xff]  ;;  %v277_v21 = vld [vmem:[#allocation8 + $0x540] sm:$0xff] }
  0xd1   :  { %1871 = vmatpush1.bf16.msra.mxu0 %v1870_v32  ;;  %v1890_v32 = vpack.c.bf16 %v241_v24, %v237_v22  ;;  %v1908_v22 = vpack.c.bf16 %v282_v12, %v278_v11  ;;  %v544_v24 = vld [vmem:[#allocation9 + $0x598] sm:$0xff]  ;;  %v286_v26 = vld [vmem:[#allocation8 + $0x588] sm:$0xff] }
  0xd2   :  { %1873 = vmatprep.subr.bf16.mxu0 %v1872_v37  ;;  %v1892_v37 = vpack.c.bf16 %v250_v28, %v246_v27  ;;  %v548_v25 = vld [vmem:[#allocation9 + $0x5b8] sm:$0xff]  ;;  %v290_v27 = vld [vmem:[#allocation8 + $0x5a8] sm:$0xff] }
  0xd3   :  { %1747 = vmatpush1.bf16.msra.mxu1 %v1746_v43  ;;  %v2531_v43 = vld [vmem:[#allocation3 + $0x18] sm:$0xff]  ;;  %v294_v40 = vld [vmem:[#allocation8 + $0x5c8] sm:$0xff] }
  0xd4   :  { %1749 = vmatprep.subr.bf16.mxu1 %v1748_v45  ;;  %v1894_v45 = vpack.c.bf16 %v249_v38, %v245_v36  ;;  %v1912_v36 = vpack.c.bf16 %v290_v27, %v286_v26  ;;  %v552_v38 = vld [vmem:[#allocation9 + $0x5d8] sm:$0xff]  ;;  %v298_v41 = vld [vmem:[#allocation8 + $0x5e8] sm:$0xff] }
  0xd5   :  { %1875 = vmatpush1.bf16.msra.mxu0 %v1874_v44  ;;  %v1766_v44 = vpack.c.bf16 %v507_v35, %v503_v34  ;;  %v547_v34 = vld [vmem:[#allocation9 + $0x5b0] sm:$0xff]  ;;  %v285_v35 = vld [vmem:[#allocation8 + $0x580] sm:$0xff]  ;;  %v556_v39 = vld [vmem:[#allocation9 + $0x5f8] sm:$0xff] }
  0xd6   :  { %1877 = vmatprep.subr.bf16.mxu0 %v1876_v49  ;;  %v253_v49 = vld [vmem:[#allocation8 + $0x480] sm:$0xff]  ;;  %v314_v0 = vld [vmem:[#allocation8 + $0x668] sm:$0xff] }
  0xd7   :  { %1751 = vmatpush1.bf16.msra.mxu1 %v1750_v55  ;;  %v1770_v55 = vpack.c.bf16 %v515_v48, %v511_v47  ;;  %v555_v47 = vld [vmem:[#allocation9 + $0x5f0] sm:$0xff]  ;;  %v293_v48 = vld [vmem:[#allocation8 + $0x5c0] sm:$0xff]  ;;  %v322_v11 = vld [vmem:[#allocation8 + $0x6a8] sm:$0xff] }
  0xd8   :  { %1753 = vmatprep.subr.bf16.mxu1 %v1752_v17  ;;  %v330_v26 = vld [vmem:[#allocation8 + $0x6e8] sm:$0xff] }
  0xd9   :  { %1879 = vmatpush1.bf16.msra.mxu0 %v1878_v56  ;;  %v1898_v56 = vpack.c.bf16 %v257_v51, %v253_v49  ;;  %v1916_v49 = vpack.c.bf16 %v298_v41, %v294_v40  ;;  %v560_v51 = vld [vmem:[#allocation9 + $0x618] sm:$0xff]  ;;  %v338_v40 = vld [vmem:[#allocation8 + $0x728] sm:$0xff] }
  0xda   :  { %1881 = vmatprep.subr.bf16.mxu0 %v1880_v60  ;;  %v1900_v60 = vpack.c.bf16 %v266_v54, %v262_v53  ;;  %v306_v53 = vld [vmem:[#allocation8 + $0x628] sm:$0xff] }
  0xdb   :  { %1755 = vmatpush1.bf16.msra.mxu1 %v1754_v2  ;;  %v1774_v2 = vpack.c.bf16 %v523_v58, %v519_v57  ;;  %v563_v57 = vld [vmem:[#allocation9 + $0x630] sm:$0xff]  ;;  %v301_v58 = vld [vmem:[#allocation8 + $0x600] sm:$0xff] }
  0xdc   :  { %1757 = vmatprep.subr.bf16.mxu1 %v1756_v4  ;;  %v527_v4 = vld [vmem:[#allocation9 + $0x510] sm:$0xff] }
  0xdd   :  { %1883 = vmatpush1.bf16.msra.mxu0 %v1882_v3  ;;  %v1776_v3 = vpack.c.bf16 %v532_v63, %v528_v62  ;;  %v1778_v13 = vpack.c.bf16 %v531_v5, %v527_v4  ;;  %v572_v62 = vld [vmem:[#allocation9 + $0x678] sm:$0xff]  ;;  %v310_v63 = vld [vmem:[#allocation8 + $0x648] sm:$0xff]  ;;  %v571_v4 = vld [vmem:[#allocation9 + $0x670] sm:$0xff] }
  0xde   :  { %1885 = vmatprep.subr.bf16.mxu0 %v1884_v8  ;;  %v273_v8 = vld [vmem:[#allocation8 + $0x520] sm:$0xff] }
  0xdf   :  { %1759 = vmatpush1.bf16.msra.mxu1 %v1758_v14  ;;  %v1906_v14 = vpack.c.bf16 %v273_v8, %v269_v6  ;;  %v309_v5 = vld [vmem:[#allocation8 + $0x640] sm:$0xff]  ;;  %v1924_v6 = vpack.c.bf16 %v314_v0, %v310_v63  ;;  %v576_v8 = vld [vmem:[#allocation9 + $0x698] sm:$0xff]  ;;  %v354_v63 = vld [vmem:[#allocation8 + $0x7a8] sm:$0xff] }
  0xe0   :  { %1761 = vmatprep.subr.bf16.mxu1 %v1760_v16  ;;  %v535_v16 = vld [vmem:[#allocation9 + $0x550] sm:$0xff] }
  0xe1   :  { %1887 = vmatpush1.bf16.msra.mxu0 %v1886_v15  ;;  %v1780_v15 = vpack.c.bf16 %v540_v10, %v536_v9  ;;  %v1782_v28 = vpack.c.bf16 %v539_v19, %v535_v16  ;;  %v580_v9 = vld [vmem:[#allocation9 + $0x6b8] sm:$0xff]  ;;  %v318_v10 = vld [vmem:[#allocation8 + $0x688] sm:$0xff]  ;;  %v579_v16 = vld [vmem:[#allocation9 + $0x6b0] sm:$0xff] }
  0xe2   :  { %1889 = vmatprep.subr.bf16.mxu0 %v1888_v23  ;;  %828 = vmatmul.mubr.f32.vlgmr.msra.gmra.mrb[2].mxu1 %v2521_v18  ;;  %v524_v18 = vld [vmem:[#allocation9 + $0x4f8] sm:$0xff]  ;;  %v281_v23 = vld [vmem:[#allocation8 + $0x560] sm:$0xff] }
  0xe3   :  { %1763 = vmatpush1.bf16.msra.mxu1 %v1762_v29  ;;  %898 = vmatprep.mubr.f32.mxu1 %v2518_v20  ;;  %v1772_v17 = vpack.c.bf16 %v524_v18, %v520_v52  ;;  %v1902_v20 = vpack.c.bf16 %v265_v61, %v261_v59  ;;  %v1910_v29 = vpack.c.bf16 %v281_v23, %v277_v21  ;;  %v564_v52 = vld [vmem:[#allocation9 + $0x638] sm:$0xff]  ;;  %v302_v18 = vld [vmem:[#allocation8 + $0x608] sm:$0xff]  ;;  %v317_v19 = vld [vmem:[#allocation8 + $0x680] sm:$0xff] }
  0xe4   :  { %970 = vmatmul.mubr.f32.vlgmr.msra.gmra.mrb[0].mxu0 %v2528_v30  ;;  %1765 = vmatprep.subr.bf16.mxu1 %v1764_v33  ;;  %v543_v33 = vld [vmem:[#allocation9 + $0x590] sm:$0xff]  ;;  %v1920_v59 = vpack.c.bf16 %v306_v53, %v302_v18  ;;  %v568_v61 = vld [vmem:[#allocation9 + $0x658] sm:$0xff]  ;;  %v1928_v21 = vpack.c.bf16 %v322_v11, %v318_v10  ;;  %v346_v18 = vld [vmem:[#allocation8 + $0x768] sm:$0xff] }
  0xe5   :  { %1891 = vmatpush1.bf16.msra.mxu0 %v1890_v32  ;;  %1040 = vmatprep.mubr.f32.mxu0 %v2531_v43  ;;  %v1784_v32 = vpack.c.bf16 %v548_v25, %v544_v24  ;;  %v1786_v42 = vpack.c.bf16 %v547_v34, %v543_v33  ;;  %v584_v23 = vld [vmem:[#allocation9 + $0x6d8] sm:$0xff]  ;;  %v326_v25 = vld [vmem:[#allocation8 + $0x6c8] sm:$0xff]  ;;  %v587_v33 = vld [vmem:[#allocation9 + $0x6f0] sm:$0xff] }
  0xe6   :  { %1893 = vmatprep.subr.bf16.mxu0 %v1892_v37  ;;  %v289_v37 = vld [vmem:[#allocation8 + $0x5a0] sm:$0xff]  ;;  %v588_v24 = vld [vmem:[#allocation9 + $0x6f8] sm:$0xff]  ;;  %v362_v10 = vld [vmem:[#allocation8 + $0x7e8] sm:$0xff] }
  0xe7   :  { %1767 = vmatpush1.bf16.msra.mxu1 %v1766_v44  ;;  %v1914_v44 = vpack.c.bf16 %v289_v37, %v285_v35  ;;  %v325_v34 = vld [vmem:[#allocation8 + $0x6c0] sm:$0xff]  ;;  %v1932_v35 = vpack.c.bf16 %v330_v26, %v326_v25  ;;  %v592_v37 = vld [vmem:[#allocation9 + $0x718] sm:$0xff] }
  0xe8   :  { %1769 = vmatprep.subr.bf16.mxu1 %v1768_v46  ;;  %v551_v46 = vld [vmem:[#allocation9 + $0x5d0] sm:$0xff] }
  0xe9   :  { %1895 = vmatpush1.bf16.msra.mxu0 %v1894_v45  ;;  %v1788_v45 = vpack.c.bf16 %v556_v39, %v552_v38  ;;  %v1790_v54 = vpack.c.bf16 %v555_v47, %v551_v46  ;;  %v596_v38 = vld [vmem:[#allocation9 + $0x738] sm:$0xff]  ;;  %v334_v39 = vld [vmem:[#allocation8 + $0x708] sm:$0xff]  ;;  %v595_v46 = vld [vmem:[#allocation9 + $0x730] sm:$0xff] }
  0xea   :  { %1897 = vmatprep.subr.bf16.mxu0 %v1896_v50  ;;  %v297_v50 = vld [vmem:[#allocation8 + $0x5e0] sm:$0xff] }
  0xeb   :  { %1771 = vmatpush1.bf16.msra.mxu1 %v1770_v55  ;;  %v1918_v55 = vpack.c.bf16 %v297_v50, %v293_v48  ;;  %v333_v47 = vld [vmem:[#allocation8 + $0x700] sm:$0xff]  ;;  %v1936_v48 = vpack.c.bf16 %v338_v40, %v334_v39  ;;  %v600_v50 = vld [vmem:[#allocation9 + $0x758] sm:$0xff]  ;;  %v2240_v40 = vld [vmem:[#allocation6 + $0x10] sm:$0xff] }
  0xec   :  { %1773 = vmatprep.subr.bf16.mxu1 %v1772_v17  ;;  %v559_v17 = vld [vmem:[#allocation9 + $0x610] sm:$0xff]  ;;  %v132_v39 = vld [vmem:[#allocation8 + $0xb8] sm:$0xff] }
  0xed   :  { %1899 = vmatpush1.bf16.msra.mxu0 %v1898_v56  ;;  %v1792_v56 = vpack.c.bf16 %v564_v52, %v560_v51  ;;  %v1794_v1 = vpack.c.bf16 %v563_v57, %v559_v17  ;;  %v604_v51 = vld [vmem:[#allocation9 + $0x778] sm:$0xff]  ;;  %v342_v52 = vld [vmem:[#allocation8 + $0x748] sm:$0xff]  ;;  %v603_v17 = vld [vmem:[#allocation9 + $0x770] sm:$0xff] }
  0xee   :  { %1901 = vmatprep.subr.bf16.mxu0 %v1900_v60  ;;  %v305_v60 = vld [vmem:[#allocation8 + $0x620] sm:$0xff] }
  0xef   :  { %1775 = vmatpush1.bf16.msra.mxu1 %v1774_v2  ;;  %v1922_v2 = vpack.c.bf16 %v305_v60, %v301_v58  ;;  %v341_v57 = vld [vmem:[#allocation8 + $0x740] sm:$0xff]  ;;  %v1940_v58 = vpack.c.bf16 %v346_v18, %v342_v52  ;;  %v608_v60 = vld [vmem:[#allocation9 + $0x798] sm:$0xff] }
  0xf0   :  { %1777 = vmatprep.subr.bf16.mxu1 %v1776_v3  ;;  %v567_v3 = vld [vmem:[#allocation9 + $0x650] sm:$0xff] }
  0xf1   :  { %1903 = vmatpush1.bf16.msra.mxu0 %v1902_v20  ;;  %v1796_v20 = vpack.c.bf16 %v572_v62, %v568_v61  ;;  %v1798_v12 = vpack.c.bf16 %v571_v4, %v567_v3  ;;  %v612_v61 = vld [vmem:[#allocation9 + $0x7b8] sm:$0xff]  ;;  %v350_v62 = vld [vmem:[#allocation8 + $0x788] sm:$0xff]  ;;  %v611_v3 = vld [vmem:[#allocation9 + $0x7b0] sm:$0xff] }
  0xf2   :  { %1905 = vmatprep.subr.bf16.mxu0 %v1904_v7  ;;  %v313_v7 = vld [vmem:[#allocation8 + $0x660] sm:$0xff] }
  0xf3   :  { %1779 = vmatpush1.bf16.msra.mxu1 %v1778_v13  ;;  %v1926_v13 = vpack.c.bf16 %v313_v7, %v309_v5  ;;  %v349_v4 = vld [vmem:[#allocation8 + $0x780] sm:$0xff]  ;;  %v1944_v5 = vpack.c.bf16 %v354_v63, %v350_v62  ;;  %v616_v7 = vld [vmem:[#allocation9 + $0x7d8] sm:$0xff] }
  0xf4   :  { %1781 = vmatprep.subr.bf16.mxu1 %v1780_v15  ;;  %v575_v15 = vld [vmem:[#allocation9 + $0x690] sm:$0xff]  ;;  %v1227_v63 = vld [vmem:[#allocation11 + $0x40] sm:$0xff] }
  0xf5   :  { %1907 = vmatpush1.bf16.msra.mxu0 %v1906_v14  ;;  %v1800_v14 = vpack.c.bf16 %v580_v9, %v576_v8  ;;  %v1802_v27 = vpack.c.bf16 %v579_v16, %v575_v15  ;;  %v620_v8 = vld [vmem:[#allocation9 + $0x7f8] sm:$0xff]  ;;  %v358_v9 = vld [vmem:[#allocation8 + $0x7c8] sm:$0xff]  ;;  %v619_v15 = vld [vmem:[#allocation9 + $0x7f0] sm:$0xff] }
  0xf6   :  { %1909 = vmatprep.subr.bf16.mxu0 %v1908_v22  ;;  %v321_v22 = vld [vmem:[#allocation8 + $0x6a0] sm:$0xff] }
  0xf7   :  { %1783 = vmatpush1.bf16.msra.mxu1 %v1782_v28  ;;  %v1930_v28 = vpack.c.bf16 %v321_v22, %v317_v19  ;;  %v357_v16 = vld [vmem:[#allocation8 + $0x7c0] sm:$0xff]  ;;  %v1948_v19 = vpack.c.bf16 %v362_v10, %v358_v9  ;;  %v112_v22 = vld [vmem:[#allocation8 + $0x18] sm:$0xff]  ;;  %v1233_v10 = vld [vmem:[#allocation11 + $0x70] sm:$0xff] }
  0xf8   :  { %1785 = vmatprep.subr.bf16.mxu1 %v1784_v32  ;;  %v583_v32 = vld [vmem:[#allocation9 + $0x6d0] sm:$0xff]  ;;  %v1231_v9 = vld [vmem:[#allocation11 + $0x60] sm:$0xff] }
  0xf9   :  { %1911 = vmatpush1.bf16.msra.mxu0 %v1910_v29  ;;  %v1804_v29 = vpack.c.bf16 %v588_v24, %v584_v23  ;;  %v1806_v41 = vpack.c.bf16 %v587_v33, %v583_v32  ;;  %v116_v23 = vld [vmem:[#allocation8 + $0x38] sm:$0xff] }
  0xfa   :  { %1913 = vmatprep.subr.bf16.mxu0 %v1912_v36  ;;  %v329_v36 = vld [vmem:[#allocation8 + $0x6e0] sm:$0xff]  ;;  %v1952_v26 = vpack.c.bf16 %v116_v23, %v112_v22  ;;  %v124_v32 = vld [vmem:[#allocation8 + $0x78] sm:$0xff]  ;;  %v151_v22 = vld [vmem:[#allocation8 + $0x150] sm:$0xff] }
  0xfb   :  { %1787 = vmatpush1.bf16.msra.mxu1 %v1786_v42  ;;  %v1934_v42 = vpack.c.bf16 %v329_v36, %v325_v34  ;;  %v2536_v34 = vld [vmem:[#allocation3 + $0x10] sm:$0xff] }
  0xfc   :  { %1789 = vmatprep.subr.bf16.mxu1 %v1788_v45  ;;  %v591_v45 = vld [vmem:[#allocation9 + $0x710] sm:$0xff] }
  0xfd   :  { %1915 = vmatpush1.bf16.msra.mxu0 %v1914_v44  ;;  %v1808_v44 = vpack.c.bf16 %v596_v38, %v592_v37  ;;  %v1810_v53 = vpack.c.bf16 %v595_v46, %v591_v45  ;;  %v119_v36 = vld [vmem:[#allocation8 + $0x50] sm:$0xff]  ;;  %v128_v38 = vld [vmem:[#allocation8 + $0x98] sm:$0xff]  ;;  %v1219_v46 = vld [vmem:[#allocation11] sm:$0xff] }
  0xfe   :  { %1917 = vmatprep.subr.bf16.mxu0 %v1916_v49  ;;  %v337_v49 = vld [vmem:[#allocation8 + $0x720] sm:$0xff]  ;;  %v123_v37 = vld [vmem:[#allocation8 + $0x70] sm:$0xff]  ;;  %v1222_v45 = vld [vmem:[#allocation11 + $0x18] sm:$0xff]  ;;  %v1960_v52 = vpack.c.bf16 %v132_v39, %v128_v38 }
  0xff   :  { %1791 = vmatpush1.bf16.msra.mxu1 %v1790_v54  ;;  %v1938_v54 = vpack.c.bf16 %v337_v49, %v333_v47  ;;  %v1958_v47 = vpack.c.bf16 %v123_v37, %v119_v36  ;;  %v1221_v49 = vld [vmem:[#allocation11 + $0x10] sm:$0xff]  ;;  %v1239_v39 = vld [vmem:[#allocation11 + $0xa0] sm:$0xff] }
 0x100   :  { %1793 = vmatprep.subr.bf16.mxu1 %v1792_v56  ;;  %v599_v56 = vld [vmem:[#allocation9 + $0x750] sm:$0xff]  ;;  %v2082_v18 = vpack.c.bf16 %v1221_v49, %v1219_v46  ;;  %v168_v46 = vld [vmem:[#allocation8 + $0x1d8] sm:$0xff] }
 0x101   :  { %1919 = vmatpush1.bf16.msra.mxu0 %v1918_v55  ;;  %v1812_v55 = vpack.c.bf16 %v604_v51, %v600_v50  ;;  %v1814_v0 = vpack.c.bf16 %v603_v17, %v599_v56  ;;  %v1224_v50 = vld [vmem:[#allocation11 + $0x28] sm:$0xff]  ;;  %v1226_v51 = vld [vmem:[#allocation11 + $0x38] sm:$0xff]  ;;  %v159_v37 = vld [vmem:[#allocation8 + $0x190] sm:$0xff] }
 0x102   :  { %1921 = vmatprep.subr.bf16.mxu0 %v1920_v59  ;;  %v345_v59 = vld [vmem:[#allocation8 + $0x760] sm:$0xff]  ;;  %v1228_v56 = vld [vmem:[#allocation11 + $0x48] sm:$0xff]  ;;  %v136_v17 = vld [vmem:[#allocation8 + $0xd8] sm:$0xff] }
 0x103   :  { %1795 = vmatpush1.bf16.msra.mxu1 %v1794_v1  ;;  %v1942_v1 = vpack.c.bf16 %v345_v59, %v341_v57  ;;  %v140_v57 = vld [vmem:[#allocation8 + $0xf8] sm:$0xff] }
 0x104   :  { %1797 = vmatprep.subr.bf16.mxu1 %v1796_v20  ;;  %v607_v20 = vld [vmem:[#allocation9 + $0x790] sm:$0xff] }
 0x105   :  { %1923 = vmatpush1.bf16.msra.mxu0 %v1922_v2  ;;  %v1816_v2 = vpack.c.bf16 %v612_v61, %v608_v60  ;;  %v1818_v11 = vpack.c.bf16 %v611_v3, %v607_v20  ;;  %v135_v61 = vld [vmem:[#allocation8 + $0xd0] sm:$0xff]  ;;  %v1234_v20 = vld [vmem:[#allocation11 + $0x78] sm:$0xff] }
 0x106   :  { %1925 = vmatprep.subr.bf16.mxu0 %v1924_v6  ;;  %v353_v6 = vld [vmem:[#allocation8 + $0x7a0] sm:$0xff]  ;;  %v144_v3 = vld [vmem:[#allocation8 + $0x118] sm:$0xff] }
 0x107   :  { %1799 = vmatpush1.bf16.msra.mxu1 %v1798_v12  ;;  %v1946_v12 = vpack.c.bf16 %v353_v6, %v349_v4  ;;  %v148_v4 = vld [vmem:[#allocation8 + $0x138] sm:$0xff] }
 0x108   :  { %1801 = vmatprep.subr.bf16.mxu1 %v1800_v14  ;;  %v615_v14 = vld [vmem:[#allocation9 + $0x7d0] sm:$0xff] }
 0x109   :  { %1927 = vmatpush1.bf16.msra.mxu0 %v1926_v13  ;;  %v1820_v13 = vpack.c.bf16 %v620_v8, %v616_v7  ;;  %v1822_v24 = vpack.c.bf16 %v619_v15, %v615_v14  ;;  %v143_v7 = vld [vmem:[#allocation8 + $0x110] sm:$0xff]  ;;  %v1238_v14 = vld [vmem:[#allocation11 + $0x98] sm:$0xff] }
 0x10a   :  { %1929 = vmatprep.subr.bf16.mxu0 %v1928_v21  ;;  %v361_v21 = vld [vmem:[#allocation8 + $0x7e0] sm:$0xff]  ;;  %v152_v15 = vld [vmem:[#allocation8 + $0x158] sm:$0xff] }
 0x10b   :  { %1803 = vmatpush1.bf16.msra.mxu1 %v1802_v27  ;;  %v1950_v25 = vpack.c.bf16 %v361_v21, %v357_v16  ;;  %v111_v27 = vld [vmem:[#allocation8 + $0x10] sm:$0xff]  ;;  %v156_v16 = vld [vmem:[#allocation8 + $0x178] sm:$0xff] }
 0x10c   :  { %1805 = vmatprep.subr.bf16.mxu1 %v1804_v29  ;;  %v120_v29 = vld [vmem:[#allocation8 + $0x58] sm:$0xff] }
 0x10d   :  { %1931 = vmatpush1.bf16.msra.mxu0 %v1930_v28  ;;  %v115_v28 = vld [vmem:[#allocation8 + $0x30] sm:$0xff] }
 0x10e   :  { %1933 = vmatprep.subr.bf16.mxu0 %v1932_v35  ;;  %v1954_v33 = vpack.c.bf16 %v115_v28, %v111_v27  ;;  %v1956_v35 = vpack.c.bf16 %v124_v32, %v120_v29  ;;  %v155_v27 = vld [vmem:[#allocation8 + $0x170] sm:$0xff]  ;;  %v1240_v28 = vld [vmem:[#allocation11 + $0xa8] sm:$0xff]  ;;  %v1242_v29 = vld [vmem:[#allocation11 + $0xb8] sm:$0xff] }
 0x10f   :  { %1807 = vmatpush1.bf16.msra.mxu1 %v1806_v41  ;;  %v127_v41 = vld [vmem:[#allocation8 + $0x90] sm:$0xff]  ;;  %v160_v32 = vld [vmem:[#allocation8 + $0x198] sm:$0xff]  ;;  %v1974_v36 = vpack.c.bf16 %v155_v27, %v151_v22  ;;  %v2100_v38 = vpack.c.bf16 %v1242_v29, %v1240_v28  ;;  %v1260_v27 = vld [vmem:[#allocation11 + $0x148] sm:$0xff] }
 0x110   :  { %1809 = vmatprep.subr.bf16.mxu1 %v1808_v44  ;;  %v1220_v44 = vld [vmem:[#allocation11 + $0x8] sm:$0xff]  ;;  %v1262_v28 = vld [vmem:[#allocation11 + $0x158] sm:$0xff] }
 0x111   :  { %1935 = vmatpush1.bf16.msra.mxu0 %v1934_v42  ;;  %v131_v42 = vld [vmem:[#allocation8 + $0xb0] sm:$0xff]  ;;  %v200_v29 = vld [vmem:[#allocation8 + $0x2d8] sm:$0xff] }
 0x112   :  { %1937 = vmatprep.subr.bf16.mxu0 %v1936_v48  ;;  %v2080_v48 = vpack.c.bf16 %v1222_v45, %v1220_v44  ;;  %v1962_v60 = vpack.c.bf16 %v131_v42, %v127_v41  ;;  %v163_v42 = vld [vmem:[#allocation8 + $0x1b0] sm:$0xff]  ;;  %v1244_v44 = vld [vmem:[#allocation11 + $0xc8] sm:$0xff]  ;;  %v1246_v45 = vld [vmem:[#allocation11 + $0xd8] sm:$0xff] }
 0x113   :  { %1811 = vmatpush1.bf16.msra.mxu1 %v1810_v53  ;;  %v2084_v53 = vpack.c.bf16 %v1226_v51, %v1224_v50  ;;  %v1978_v49 = vpack.c.bf16 %v163_v42, %v159_v37  ;;  %v167_v50 = vld [vmem:[#allocation8 + $0x1d0] sm:$0xff]  ;;  %v2104_v51 = vpack.c.bf16 %v1246_v45, %v1244_v44  ;;  %v2120_v37 = vpack.c.bf16 %v1262_v28, %v1260_v27  ;;  %v1264_v42 = vld [vmem:[#allocation11 + $0x168] sm:$0xff]  ;;  %v1266_v44 = vld [vmem:[#allocation11 + $0x178] sm:$0xff] }
 0x114   :  { %1813 = vmatprep.subr.bf16.mxu1 %v1812_v55  ;;  %v1225_v55 = vld [vmem:[#allocation11 + $0x30] sm:$0xff]  ;;  %v208_v45 = vld [vmem:[#allocation8 + $0x318] sm:$0xff] }
 0x115   :  { %1939 = vmatpush1.bf16.msra.mxu0 %v1938_v54  ;;  %v1223_v54 = vld [vmem:[#allocation11 + $0x20] sm:$0xff]  ;;  %v248_v27 = vld [vmem:[#allocation8 + $0x458] sm:$0xff] }
 0x116   :  { %1941 = vmatprep.subr.bf16.mxu0 %v1940_v58  ;;  %v1230_v58 = vld [vmem:[#allocation11 + $0x58] sm:$0xff]  ;;  %v2086_v59 = vpack.c.bf16 %v1225_v55, %v1223_v54  ;;  %v171_v54 = vld [vmem:[#allocation8 + $0x1f0] sm:$0xff]  ;;  %v1248_v55 = vld [vmem:[#allocation11 + $0xe8] sm:$0xff] }
 0x117   :  { %1815 = vmatpush1.bf16.msra.mxu1 %v1814_v0  ;;  %v2088_v62 = vpack.c.bf16 %v1230_v58, %v1228_v56  ;;  %v1229_v0 = vld [vmem:[#allocation11 + $0x50] sm:$0xff]  ;;  %v1250_v56 = vld [vmem:[#allocation11 + $0xf8] sm:$0xff] }
 0x118   :  { %1817 = vmatprep.subr.bf16.mxu1 %v1816_v2  ;;  %v1232_v2 = vld [vmem:[#allocation11 + $0x68] sm:$0xff]  ;;  %v252_v28 = vld [vmem:[#allocation8 + $0x478] sm:$0xff] }
 0x119   :  { %1943 = vmatpush1.bf16.msra.mxu0 %v1942_v1  ;;  %v139_v1 = vld [vmem:[#allocation8 + $0xf0] sm:$0xff]  ;;  %v2092_v8 = vpack.c.bf16 %v1234_v20, %v1232_v2  ;;  %v1254_v2 = vld [vmem:[#allocation11 + $0x118] sm:$0xff] }
 0x11a   :  { %1945 = vmatprep.subr.bf16.mxu0 %v1944_v5  ;;  %v2090_v5 = vpack.c.bf16 %v1229_v0, %v1227_v63  ;;  %v1966_v6 = vpack.c.bf16 %v139_v1, %v135_v61  ;;  %v2108_v61 = vpack.c.bf16 %v1250_v56, %v1248_v55  ;;  %v1249_v63 = vld [vmem:[#allocation11 + $0xf0] sm:$0xff]  ;;  %v1252_v1 = vld [vmem:[#allocation11 + $0x108] sm:$0xff]  ;;  %v184_v20 = vld [vmem:[#allocation8 + $0x258] sm:$0xff] }
 0x11b   :  { %1819 = vmatpush1.bf16.msra.mxu1 %v1818_v11  ;;  %v1968_v11 = vpack.c.bf16 %v148_v4, %v144_v3  ;;  %v188_v3 = vld [vmem:[#allocation8 + $0x278] sm:$0xff] }
 0x11c   :  { %1821 = vmatprep.subr.bf16.mxu1 %v1820_v13  ;;  %v1236_v13 = vld [vmem:[#allocation11 + $0x88] sm:$0xff]  ;;  %v1270_v55 = vld [vmem:[#allocation11 + $0x198] sm:$0xff] }
 0x11d   :  { %1947 = vmatpush1.bf16.msra.mxu0 %v1946_v12  ;;  %v147_v12 = vld [vmem:[#allocation8 + $0x130] sm:$0xff]  ;;  %v2096_v23 = vpack.c.bf16 %v1238_v14, %v1236_v13  ;;  %v1258_v13 = vld [vmem:[#allocation11 + $0x138] sm:$0xff] }
 0x11e   :  { %1949 = vmatprep.subr.bf16.mxu0 %v1948_v19  ;;  %v2094_v19 = vpack.c.bf16 %v1233_v10, %v1231_v9  ;;  %v1970_v21 = vpack.c.bf16 %v147_v12, %v143_v7  ;;  %v2112_v7 = vpack.c.bf16 %v1254_v2, %v1252_v1  ;;  %v1253_v9 = vld [vmem:[#allocation11 + $0x110] sm:$0xff]  ;;  %v1988_v10 = vpack.c.bf16 %v188_v3, %v184_v20  ;;  %v1256_v12 = vld [vmem:[#allocation11 + $0x128] sm:$0xff]  ;;  %v192_v14 = vld [vmem:[#allocation8 + $0x298] sm:$0xff] }
 0x11f   :  { %1823 = vmatpush1.bf16.msra.mxu1 %v1822_v24  ;;  %v1235_v24 = vld [vmem:[#allocation11 + $0x80] sm:$0xff]  ;;  %v2116_v22 = vpack.c.bf16 %v1258_v13, %v1256_v12  ;;  %v216_v56 = vld [vmem:[#allocation8 + $0x358] sm:$0xff] }
 0x120   :  { %1953 = vmatprep.subr.bf16.mxu1 %v1952_v26  ;;  %v1972_v26 = vpack.c.bf16 %v156_v16, %v152_v15  ;;  %v196_v15 = vld [vmem:[#allocation8 + $0x2b8] sm:$0xff] }
 0x121   :  { %1951 = vmatpush1.bf16.msra.mxu0 %v1950_v25  ;;  %v1237_v25 = vld [vmem:[#allocation11 + $0x90] sm:$0xff]  ;;  %v1274_v1 = vld [vmem:[#allocation11 + $0x1b8] sm:$0xff] }
 0x122   :  { %899 = vmatmul.mubr.f32.vlgmr.msra.gmra.mrb[2].mxu1 %v2240_v40  ;;  %2081 = vmatprep.subr.bf16.mxu0 %v2080_v48  ;;  %v1241_v40 = vld [vmem:[#allocation11 + $0xb0] sm:$0xff]  ;;  %v224_v2 = vld [vmem:[#allocation8 + $0x398] sm:$0xff] }
 0x123   :  { %1955 = vmatpush1.bf16.msra.mxu1 %v1954_v33  ;;  %1111 = vmatprep.mubr.f32.mxu1 %v2525_v31  ;;  %v1964_v31 = vpack.c.bf16 %v140_v57, %v136_v17  ;;  %v164_v33 = vld [vmem:[#allocation8 + $0x1b8] sm:$0xff]  ;;  %v2102_v48 = vpack.c.bf16 %v1241_v40, %v1239_v39  ;;  %v1261_v39 = vld [vmem:[#allocation11 + $0x150] sm:$0xff] }
 0x124   :  { %1041 = vmatmul.mubr.f32.vlgmr.msra.gmra.mrb[0].mxu0 %v2536_v34  ;;  %1957 = vmatprep.subr.bf16.mxu1 %v1956_v35  ;;  %v2098_v35 = vpack.c.bf16 %v1237_v25, %v1235_v24  ;;  %v1976_v41 = vpack.c.bf16 %v164_v33, %v160_v32  ;;  %v176_v17 = vld [vmem:[#allocation8 + $0x218] sm:$0xff]  ;;  %v1257_v24 = vld [vmem:[#allocation11 + $0x130] sm:$0xff]  ;;  %v1992_v25 = vpack.c.bf16 %v196_v15, %v192_v14 }
 0x125   :  { %2083 = vmatpush1.bf16.msra.mxu0 %v2082_v18  ;;  %v1245_v18 = vld [vmem:[#allocation11 + $0xd0] sm:$0xff]  ;;  %v180_v57 = vld [vmem:[#allocation8 + $0x238] sm:$0xff] }
 0x126   :  { %2085 = vmatprep.subr.bf16.mxu0 %v2084_v53  ;;  %v1984_v0 = vpack.c.bf16 %v180_v57, %v176_v17  ;;  %v204_v32 = vld [vmem:[#allocation8 + $0x2f8] sm:$0xff] }
 0x127   :  { %1959 = vmatpush1.bf16.msra.mxu1 %v1958_v47  ;;  %v172_v47 = vld [vmem:[#allocation8 + $0x1f8] sm:$0xff]  ;;  %v1996_v40 = vpack.c.bf16 %v204_v32, %v200_v29  ;;  %v2020_v32 = vpack.c.bf16 %v252_v28, %v248_v27 }
 0x128   :  { %1961 = vmatprep.subr.bf16.mxu1 %v1960_v52  ;;  %v1243_v52 = vld [vmem:[#allocation11 + $0xc0] sm:$0xff]  ;;  %v1980_v53 = vpack.c.bf16 %v172_v47, %v168_v46  ;;  %v212_v46 = vld [vmem:[#allocation8 + $0x338] sm:$0xff] }
 0x129   :  { %2087 = vmatpush1.bf16.msra.mxu0 %v2086_v59  ;;  %v2106_v58 = vpack.c.bf16 %v1245_v18, %v1243_v52  ;;  %v1982_v59 = vpack.c.bf16 %v171_v54, %v167_v50  ;;  %v2124_v50 = vpack.c.bf16 %v1266_v44, %v1264_v42  ;;  %v1265_v52 = vld [vmem:[#allocation11 + $0x170] sm:$0xff]  ;;  %v2000_v18 = vpack.c.bf16 %v212_v46, %v208_v45  ;;  %v1268_v54 = vld [vmem:[#allocation11 + $0x188] sm:$0xff]  ;;  %v220_v17 = vld [vmem:[#allocation8 + $0x378] sm:$0xff] }
 0x12a   :  { %2089 = vmatprep.subr.bf16.mxu0 %v2088_v62  ;;  %v1247_v62 = vld [vmem:[#allocation11 + $0xe0] sm:$0xff]  ;;  %v228_v20 = vld [vmem:[#allocation8 + $0x3b8] sm:$0xff] }
 0x12b   :  { %1963 = vmatpush1.bf16.msra.mxu1 %v1962_v60  ;;  %v175_v60 = vld [vmem:[#allocation8 + $0x210] sm:$0xff]  ;;  %v2110_v4 = vpack.c.bf16 %v1249_v63, %v1247_v62  ;;  %v2004_v63 = vpack.c.bf16 %v220_v17, %v216_v56  ;;  %v236_v12 = vld [vmem:[#allocation8 + $0x3f8] sm:$0xff] }
 0x12c   :  { %1965 = vmatprep.subr.bf16.mxu1 %v1964_v31  ;;  %v179_v31 = vld [vmem:[#allocation8 + $0x230] sm:$0xff]  ;;  %v264_v42 = vld [vmem:[#allocation8 + $0x4d8] sm:$0xff] }
 0x12d   :  { %2091 = vmatpush1.bf16.msra.mxu0 %v2090_v5  ;;  %v1986_v5 = vpack.c.bf16 %v179_v31, %v175_v60  ;;  %v2128_v60 = vpack.c.bf16 %v1270_v55, %v1268_v54  ;;  %v1269_v62 = vld [vmem:[#allocation11 + $0x190] sm:$0xff]  ;;  %v1272_v31 = vld [vmem:[#allocation11 + $0x1a8] sm:$0xff]  ;;  %v268_v44 = vld [vmem:[#allocation8 + $0x4f8] sm:$0xff] }
 0x12e   :  { %2093 = vmatprep.subr.bf16.mxu0 %v2092_v8  ;;  %v1251_v8 = vld [vmem:[#allocation11 + $0x100] sm:$0xff]  ;;  %v2028_v46 = vpack.c.bf16 %v268_v44, %v264_v42  ;;  %v279_v56 = vld [vmem:[#allocation8 + $0x550] sm:$0xff]  ;;  %v316_v27 = vld [vmem:[#allocation8 + $0x678] sm:$0xff] }
 0x12f   :  { %1967 = vmatpush1.bf16.msra.mxu1 %v1966_v6  ;;  %v183_v6 = vld [vmem:[#allocation8 + $0x250] sm:$0xff]  ;;  %v2114_v16 = vpack.c.bf16 %v1253_v9, %v1251_v8  ;;  %v2008_v8 = vpack.c.bf16 %v228_v20, %v224_v2  ;;  %v300_v2 = vld [vmem:[#allocation8 + $0x5f8] sm:$0xff] }
 0x130   :  { %1969 = vmatprep.subr.bf16.mxu1 %v1968_v11  ;;  %v187_v11 = vld [vmem:[#allocation8 + $0x270] sm:$0xff] }
 0x131   :  { %2095 = vmatpush1.bf16.msra.mxu0 %v2094_v19  ;;  %v1990_v19 = vpack.c.bf16 %v187_v11, %v183_v6  ;;  %v1271_v6 = vld [vmem:[#allocation11 + $0x1a0] sm:$0xff]  ;;  %v223_v9 = vld [vmem:[#allocation8 + $0x390] sm:$0xff]  ;;  %v232_v11 = vld [vmem:[#allocation8 + $0x3d8] sm:$0xff] }
 0x132   :  { %2097 = vmatprep.subr.bf16.mxu0 %v2096_v23  ;;  %v1255_v23 = vld [vmem:[#allocation11 + $0x120] sm:$0xff]  ;;  %v2012_v15 = vpack.c.bf16 %v236_v12, %v232_v11  ;;  %v283_v17 = vld [vmem:[#allocation8 + $0x570] sm:$0xff]  ;;  %v304_v11 = vld [vmem:[#allocation8 + $0x618] sm:$0xff] }
 0x133   :  { %1971 = vmatpush1.bf16.msra.mxu1 %v1970_v21  ;;  %v191_v21 = vld [vmem:[#allocation8 + $0x290] sm:$0xff]  ;;  %v2118_v33 = vpack.c.bf16 %v1257_v24, %v1255_v23  ;;  %v1280_v12 = vld [vmem:[#allocation11 + $0x1e8] sm:$0xff] }
 0x134   :  { %1973 = vmatprep.subr.bf16.mxu1 %v1972_v26  ;;  %v195_v26 = vld [vmem:[#allocation8 + $0x2b0] sm:$0xff] }
 0x135   :  { %2099 = vmatpush1.bf16.msra.mxu0 %v2098_v35  ;;  %v1994_v35 = vpack.c.bf16 %v195_v26, %v191_v21  ;;  %v240_v21 = vld [vmem:[#allocation8 + $0x418] sm:$0xff]  ;;  %v243_v26 = vld [vmem:[#allocation8 + $0x430] sm:$0xff] }
 0x136   :  { %2101 = vmatprep.subr.bf16.mxu0 %v2100_v38  ;;  %v1259_v38 = vld [vmem:[#allocation11 + $0x140] sm:$0xff]  ;;  %v319_v42 = vld [vmem:[#allocation8 + $0x690] sm:$0xff] }
 0x137   :  { %1975 = vmatpush1.bf16.msra.mxu1 %v1974_v36  ;;  %v199_v36 = vld [vmem:[#allocation8 + $0x2d0] sm:$0xff]  ;;  %v2122_v47 = vpack.c.bf16 %v1261_v39, %v1259_v38 }
 0x138   :  { %1977 = vmatprep.subr.bf16.mxu1 %v1976_v41  ;;  %v203_v41 = vld [vmem:[#allocation8 + $0x2f0] sm:$0xff] }
 0x139   :  { %2103 = vmatpush1.bf16.msra.mxu0 %v2102_v48  ;;  %v1998_v48 = vpack.c.bf16 %v203_v41, %v199_v36  ;;  %v256_v36 = vld [vmem:[#allocation8 + $0x498] sm:$0xff]  ;;  %v259_v41 = vld [vmem:[#allocation8 + $0x4b0] sm:$0xff] }
 0x13a   :  { %2105 = vmatprep.subr.bf16.mxu0 %v2104_v51  ;;  %v1263_v51 = vld [vmem:[#allocation11 + $0x160] sm:$0xff]  ;;  %v323_v44 = vld [vmem:[#allocation8 + $0x6b0] sm:$0xff] }
 0x13b   :  { %1979 = vmatpush1.bf16.msra.mxu1 %v1978_v49  ;;  %v207_v49 = vld [vmem:[#allocation8 + $0x310] sm:$0xff]  ;;  %v2126_v57 = vpack.c.bf16 %v1265_v52, %v1263_v51 }
 0x13c   :  { %1981 = vmatprep.subr.bf16.mxu1 %v1980_v53  ;;  %v211_v53 = vld [vmem:[#allocation8 + $0x330] sm:$0xff] }
 0x13d   :  { %2107 = vmatpush1.bf16.msra.mxu0 %v2106_v58  ;;  %v2002_v58 = vpack.c.bf16 %v211_v53, %v207_v49  ;;  %v272_v49 = vld [vmem:[#allocation8 + $0x518] sm:$0xff]  ;;  %v271_v52 = vld [vmem:[#allocation8 + $0x510] sm:$0xff] }
 0x13e   :  { %2109 = vmatprep.subr.bf16.mxu0 %v2108_v61  ;;  %v1267_v61 = vld [vmem:[#allocation11 + $0x180] sm:$0xff]  ;;  %v284_v53 = vld [vmem:[#allocation8 + $0x578] sm:$0xff] }
 0x13f   :  { %1983 = vmatpush1.bf16.msra.mxu1 %v1982_v59  ;;  %v215_v59 = vld [vmem:[#allocation8 + $0x350] sm:$0xff]  ;;  %v2130_v3 = vpack.c.bf16 %v1269_v62, %v1267_v61 }
 0x140   :  { %1985 = vmatprep.subr.bf16.mxu1 %v1984_v0  ;;  %v219_v0 = vld [vmem:[#allocation8 + $0x370] sm:$0xff] }
 0x141   :  { %2111 = vmatpush1.bf16.msra.mxu0 %v2110_v4  ;;  %v2006_v4 = vpack.c.bf16 %v219_v0, %v215_v59  ;;  %v2038_v59 = vpack.c.bf16 %v283_v17, %v279_v56  ;;  %v291_v61 = vld [vmem:[#allocation8 + $0x5b0] sm:$0xff]  ;;  %v1276_v0 = vld [vmem:[#allocation11 + $0x1c8] sm:$0xff] }
 0x142   :  { %2113 = vmatprep.subr.bf16.mxu0 %v2112_v7  ;;  %v1273_v7 = vld [vmem:[#allocation11 + $0x1b0] sm:$0xff] }
 0x143   :  { %1987 = vmatpush1.bf16.msra.mxu1 %v1986_v5  ;;  %v2132_v5 = vpack.c.bf16 %v1274_v1, %v1272_v31  ;;  %v2134_v13 = vpack.c.bf16 %v1273_v7, %v1271_v6  ;;  %v1278_v31 = vld [vmem:[#allocation11 + $0x1d8] sm:$0xff] }
 0x144   :  { %1989 = vmatprep.subr.bf16.mxu1 %v1988_v10  ;;  %v227_v10 = vld [vmem:[#allocation8 + $0x3b0] sm:$0xff]  ;;  %v2136_v20 = vpack.c.bf16 %v1278_v31, %v1276_v0  ;;  %v360_v31 = vld [vmem:[#allocation8 + $0x7d8] sm:$0xff] }
 0x145   :  { %2115 = vmatpush1.bf16.msra.mxu0 %v2114_v16  ;;  %v2010_v14 = vpack.c.bf16 %v227_v10, %v223_v9  ;;  %v231_v16 = vld [vmem:[#allocation8 + $0x3d0] sm:$0xff] }
 0x146   :  { %2117 = vmatprep.subr.bf16.mxu0 %v2116_v22  ;;  %v244_v22 = vld [vmem:[#allocation8 + $0x438] sm:$0xff]  ;;  %v299_v9 = vld [vmem:[#allocation8 + $0x5f0] sm:$0xff] }
 0x147   :  { %1991 = vmatpush1.bf16.msra.mxu1 %v1990_v19  ;;  %v235_v19 = vld [vmem:[#allocation8 + $0x3f0] sm:$0xff]  ;;  %v2016_v24 = vpack.c.bf16 %v244_v22, %v240_v21 }
 0x148   :  { %1993 = vmatprep.subr.bf16.mxu1 %v1992_v25  ;;  %v2014_v23 = vpack.c.bf16 %v235_v19, %v231_v16  ;;  %v239_v25 = vld [vmem:[#allocation8 + $0x410] sm:$0xff]  ;;  %v1279_v16 = vld [vmem:[#allocation11 + $0x1e0] sm:$0xff] }
 0x149   :  { %2119 = vmatpush1.bf16.msra.mxu0 %v2118_v33  ;;  %v2018_v29 = vpack.c.bf16 %v243_v26, %v239_v25  ;;  %v247_v33 = vld [vmem:[#allocation8 + $0x450] sm:$0xff]  ;;  %v312_v26 = vld [vmem:[#allocation8 + $0x658] sm:$0xff] }
 0x14a   :  { %2121 = vmatprep.subr.bf16.mxu0 %v2120_v37  ;;  %v260_v37 = vld [vmem:[#allocation8 + $0x4b8] sm:$0xff]  ;;  %v1281_v19 = vld [vmem:[#allocation11 + $0x1f0] sm:$0xff] }
 0x14b   :  { %1995 = vmatpush1.bf16.msra.mxu1 %v1994_v35  ;;  %v251_v35 = vld [vmem:[#allocation8 + $0x470] sm:$0xff]  ;;  %v2024_v39 = vpack.c.bf16 %v260_v37, %v256_v36  ;;  %v2142_v21 = vpack.c.bf16 %v1281_v19, %v1279_v16 }
 0x14c   :  { %1997 = vmatprep.subr.bf16.mxu1 %v1996_v40  ;;  %v2022_v38 = vpack.c.bf16 %v251_v35, %v247_v33  ;;  %v255_v40 = vld [vmem:[#allocation8 + $0x490] sm:$0xff]  ;;  %v2052_v33 = vpack.c.bf16 %v316_v27, %v312_v26  ;;  %v1290_v26 = vld [vmem:[#allocation11 + $0x238] sm:$0xff] }
 0x14d   :  { %2123 = vmatpush1.bf16.msra.mxu0 %v2122_v47  ;;  %v2026_v45 = vpack.c.bf16 %v259_v41, %v255_v40  ;;  %v263_v47 = vld [vmem:[#allocation8 + $0x4d0] sm:$0xff] }
 0x14e   :  { %2125 = vmatprep.subr.bf16.mxu0 %v2124_v50  ;;  %v276_v50 = vld [vmem:[#allocation8 + $0x538] sm:$0xff]  ;;  %v307_v25 = vld [vmem:[#allocation8 + $0x630] sm:$0xff] }
 0x14f   :  { %1999 = vmatpush1.bf16.msra.mxu1 %v1998_v48  ;;  %v267_v48 = vld [vmem:[#allocation8 + $0x4f0] sm:$0xff]  ;;  %v2032_v51 = vpack.c.bf16 %v276_v50, %v272_v49 }
 0x150   :  { %2001 = vmatprep.subr.bf16.mxu1 %v2000_v18  ;;  %v280_v18 = vld [vmem:[#allocation8 + $0x558] sm:$0xff]  ;;  %v311_v35 = vld [vmem:[#allocation8 + $0x650] sm:$0xff] }
 0x151   :  { %2127 = vmatpush1.bf16.msra.mxu0 %v2126_v57  ;;  %v2036_v55 = vpack.c.bf16 %v284_v53, %v280_v18  ;;  %v288_v57 = vld [vmem:[#allocation8 + $0x598] sm:$0xff]  ;;  %v315_v36 = vld [vmem:[#allocation8 + $0x670] sm:$0xff] }
 0x152   :  { %2129 = vmatprep.subr.bf16.mxu0 %v2128_v60  ;;  %v287_v60 = vld [vmem:[#allocation8 + $0x590] sm:$0xff]  ;;  %v2054_v40 = vpack.c.bf16 %v315_v36, %v311_v35  ;;  %v1292_v36 = vld [vmem:[#allocation11 + $0x248] sm:$0xff] }
 0x153   :  { %2003 = vmatpush1.bf16.msra.mxu1 %v2002_v58  ;;  %v292_v58 = vld [vmem:[#allocation8 + $0x5b8] sm:$0xff]  ;;  %v2042_v7 = vpack.c.bf16 %v291_v61, %v287_v60  ;;  %v327_v49 = vld [vmem:[#allocation8 + $0x6d0] sm:$0xff] }
 0x154   :  { %2005 = vmatprep.subr.bf16.mxu1 %v2004_v63  ;;  %v2040_v62 = vpack.c.bf16 %v292_v58, %v288_v57  ;;  %v296_v63 = vld [vmem:[#allocation8 + $0x5d8] sm:$0xff]  ;;  %v331_v50 = vld [vmem:[#allocation8 + $0x6f0] sm:$0xff] }
 0x155   :  { %2131 = vmatpush1.bf16.msra.mxu0 %v2130_v3  ;;  %v1275_v3 = vld [vmem:[#allocation11 + $0x1c0] sm:$0xff]  ;;  %v2044_v10 = vpack.c.bf16 %v300_v2, %v296_v63  ;;  %v335_v18 = vld [vmem:[#allocation8 + $0x710] sm:$0xff]  ;;  %v356_v60 = vld [vmem:[#allocation8 + $0x7b8] sm:$0xff] }
 0x156   :  { %2133 = vmatprep.subr.bf16.mxu0 %v2132_v5  ;;  %v339_v53 = vld [vmem:[#allocation8 + $0x730] sm:$0xff]  ;;  %v364_v2 = vld [vmem:[#allocation8 + $0x7f8] sm:$0xff] }
 0x157   :  { %2007 = vmatpush1.bf16.msra.mxu1 %v2006_v4  ;;  %v1277_v4 = vld [vmem:[#allocation11 + $0x1d0] sm:$0xff]  ;;  %v2066_v56 = vpack.c.bf16 %v339_v53, %v335_v18 }
 0x158   :  { %2009 = vmatprep.subr.bf16.mxu1 %v2008_v8  ;;  %v2138_v6 = vpack.c.bf16 %v1277_v4, %v1275_v3  ;;  %v295_v8 = vld [vmem:[#allocation8 + $0x5d0] sm:$0xff]  ;;  %v2076_v3 = vpack.c.bf16 %v364_v2, %v360_v31  ;;  %v1311_v31 = vld [vmem:[#allocation11 + $0x2e0] sm:$0xff] }
 0x159   :  { %2135 = vmatpush1.bf16.msra.mxu0 %v2134_v13  ;;  %v1282_v13 = vld [vmem:[#allocation11 + $0x1f8] sm:$0xff]  ;;  %v2046_v22 = vpack.c.bf16 %v299_v9, %v295_v8  ;;  %v343_v57 = vld [vmem:[#allocation8 + $0x750] sm:$0xff]  ;;  %v1191_v8 = vlaneseq }
 0x15a   :  { %2137 = vmatprep.subr.bf16.mxu0 %v2136_v20  ;;  %v347_v58 = vld [vmem:[#allocation8 + $0x770] sm:$0xff] }
 0x15b   :  { %2011 = vmatpush1.bf16.msra.mxu1 %v2010_v14  ;;  %v308_v14 = vld [vmem:[#allocation8 + $0x638] sm:$0xff]  ;;  %v2070_v61 = vpack.c.bf16 %v347_v58, %v343_v57  ;;  %v351_v63 = vld [vmem:[#allocation8 + $0x790] sm:$0xff]  ;;  %v2547_v9 = vshrl.u32 %v1191_v8, 7 }
 0x15c   :  { %2013 = vmatprep.subr.bf16.mxu1 %v2012_v15  ;;  %v2140_v15 = vpack.c.bf16 %v1282_v13, %v1280_v12  ;;  %v355_v0 = vld [vmem:[#allocation8 + $0x7b0] sm:$0xff] }
 0x15d   :  { %2139 = vmatpush1.bf16.msra.mxu0 %v2138_v6  ;;  %v2074_v20 = vpack.c.bf16 %v355_v0, %v351_v63  ;;  %v359_v4 = vld [vmem:[#allocation8 + $0x7d0] sm:$0xff]  ;;  %v2558_v12 = vsub.s32 1, %v2547_v9 }
 0x15e   :  { %2141 = vmatprep.subr.bf16.mxu0 %v2140_v15  ;;  %v363_v6 = vld [vmem:[#allocation8 + $0x7f0] sm:$0xff] }
 0x15f   :  { %2015 = vmatpush1.bf16.msra.mxu1 %v2014_v23  ;;  %v2048_v23 = vpack.c.bf16 %v308_v14, %v304_v11  ;;  %v2555_v11 = vld [vmem:[%s2599_s4] sm:$0xf]  ;;  %v1289_v35 = vld [vmem:[#allocation11 + $0x230] sm:$0xff] }
 0x160   :  { %2017 = vmatprep.subr.bf16.mxu1 %v2016_v24  ;;  %v303_v24 = vld [vmem:[#allocation8 + $0x610] sm:$0xff] }
 0x161   :  { %2143 = vmatpush1.bf16.msra.mxu0 %v2142_v21  ;;  %v2050_v28 = vpack.c.bf16 %v307_v25, %v303_v24  ;;  %v1288_v25 = vld [vmem:[#allocation11 + $0x228] sm:$0xff]  ;;  %v1313_v2 = vld [vmem:[#allocation11 + $0x2f0] sm:$0xff] }
 0x162   :  { %1112 = vmatmul.mubr.f32.vlgmr.msra.gmra.mrb[2].mxu1 %v2528_v30  ;;  %v2030_v30 = vpack.c.bf16 %v267_v48, %v263_v47  ;;  %v2058_v47 = vpack.c.bf16 %v323_v44, %v319_v42  ;;  %v1317_v8 = vld [vmem:[#allocation11 + $0x310] sm:$0xff] }
 0x163   :  { %2019 = vmatpush1.bf16.msra.mxu1 %v2018_v29  ;;  %1182 = vmatprep.mubr.f32.mxu1 %v2531_v43  ;;  %v275_v43 = vld [vmem:[#allocation8 + $0x530] sm:$0xff]  ;;  %v1284_v29 = vld [vmem:[#allocation11 + $0x208] sm:$0xff] }
 0x164   :  { %2021 = vmatprep.subr.bf16.mxu1 %v2020_v32  ;;  %v2034_v54 = vpack.c.bf16 %v275_v43, %v271_v52  ;;  %v1286_v32 = vld [vmem:[#allocation11 + $0x218] sm:$0xff]  ;;  %v2062_v52 = vpack.c.bf16 %v331_v50, %v327_v49 }
 0x165   :  { %v2144_v37 = vpack.c.bf16 %v1286_v32, %v1284_v29  ;;  %v2148_v32 = vpack.c.bf16 %v1290_v26, %v1288_v25  ;;  %v1323_v25 = vld [vmem:[#allocation11 + $0x340] sm:$0xff]  ;;  %v1325_v26 = vld [vmem:[#allocation11 + $0x350] sm:$0xff] }
 0x167   :  { %2023 = vmatpush1.bf16.msra.mxu1 %v2022_v38  ;;  %v320_v38 = vld [vmem:[#allocation8 + $0x698] sm:$0xff]  ;;  %2145 = vmatprep.subr.bf16.mxu0 %v2144_v37 }
 0x168   :  { %2025 = vmatprep.subr.bf16.mxu1 %v2024_v39  ;;  %v324_v39 = vld [vmem:[#allocation8 + $0x6b8] sm:$0xff] }
 0x169   :  { %v2056_v41 = vpack.c.bf16 %v324_v39, %v320_v38  ;;  %v1294_v37 = vld [vmem:[#allocation11 + $0x258] sm:$0xff]  ;;  %v1291_v38 = vld [vmem:[#allocation11 + $0x240] sm:$0xff]  ;;  %v1293_v39 = vld [vmem:[#allocation11 + $0x250] sm:$0xff] }
 0x16a   :  { %v2154_v42 = vpack.c.bf16 %v1293_v39, %v1291_v38  ;;  %v1331_v38 = vld [vmem:[#allocation11 + $0x380] sm:$0xff]  ;;  %v1333_v39 = vld [vmem:[#allocation11 + $0x390] sm:$0xff] }
 0x16b   :  { %2027 = vmatpush1.bf16.msra.mxu1 %v2026_v45  ;;  %v328_v45 = vld [vmem:[#allocation8 + $0x6d8] sm:$0xff] }
 0x16c   :  { %2029 = vmatprep.subr.bf16.mxu1 %v2028_v46  ;;  %v332_v46 = vld [vmem:[#allocation8 + $0x6f8] sm:$0xff] }
 0x16d   :  { %v2060_v48 = vpack.c.bf16 %v332_v46, %v328_v45  ;;  %v1295_v45 = vld [vmem:[#allocation11 + $0x260] sm:$0xff]  ;;  %v1297_v46 = vld [vmem:[#allocation11 + $0x270] sm:$0xff] }
 0x16e   :  { %v2158_v49 = vpack.c.bf16 %v1297_v46, %v1295_v45  ;;  %v1335_v45 = vld [vmem:[#allocation11 + $0x3a0] sm:$0xff]  ;;  %v1337_v46 = vld [vmem:[#allocation11 + $0x3b0] sm:$0xff] }
 0x16f   :  { %2031 = vmatpush1.bf16.msra.mxu1 %v2030_v30  ;;  %v336_v30 = vld [vmem:[#allocation8 + $0x718] sm:$0xff] }
 0x170   :  { %2033 = vmatprep.subr.bf16.mxu1 %v2032_v51  ;;  %v340_v51 = vld [vmem:[#allocation8 + $0x738] sm:$0xff] }
 0x171   :  { %v2064_v43 = vpack.c.bf16 %v340_v51, %v336_v30  ;;  %v1299_v30 = vld [vmem:[#allocation11 + $0x280] sm:$0xff]  ;;  %v1301_v51 = vld [vmem:[#allocation11 + $0x290] sm:$0xff] }
 0x172   :  { %v2162_v18 = vpack.c.bf16 %v1301_v51, %v1299_v30  ;;  %v1339_v30 = vld [vmem:[#allocation11 + $0x3c0] sm:$0xff]  ;;  %v1341_v51 = vld [vmem:[#allocation11 + $0x3d0] sm:$0xff] }
 0x173   :  { %2035 = vmatpush1.bf16.msra.mxu1 %v2034_v54  ;;  %v344_v54 = vld [vmem:[#allocation8 + $0x758] sm:$0xff] }
 0x174   :  { %2037 = vmatprep.subr.bf16.mxu1 %v2036_v55  ;;  %v348_v55 = vld [vmem:[#allocation8 + $0x778] sm:$0xff] }
 0x175   :  { %v2542_v1 = vpop.f32.mrb[0].mxu1  ;;  %v2068_v17 = vpack.c.bf16 %v348_v55, %v344_v54  ;;  %v1303_v54 = vld [vmem:[#allocation11 + $0x2a0] sm:$0xff]  ;;  %v1305_v55 = vld [vmem:[#allocation11 + $0x2b0] sm:$0xff] }
 0x176   :  { %v2544_v5 = vpop.f32.mrb[1].mxu1  ;;  %v2166_v57 = vpack.c.bf16 %v1305_v55, %v1303_v54  ;;  %v1343_v54 = vld [vmem:[#allocation11 + $0x3e0] sm:$0xff]  ;;  %v1345_v55 = vld [vmem:[#allocation11 + $0x3f0] sm:$0xff] }
 0x177   :  { %2039 = vmatpush1.bf16.msra.mxu1 %v2038_v59  ;;  %v352_v59 = vld [vmem:[#allocation8 + $0x798] sm:$0xff] }
 0x178   :  { %2041 = vmatprep.subr.bf16.mxu1 %v2040_v62  ;;  %v2072_v62 = vpack.c.bf16 %v356_v60, %v352_v59  ;;  %v1307_v59 = vld [vmem:[#allocation11 + $0x2c0] sm:$0xff]  ;;  %v1309_v60 = vld [vmem:[#allocation11 + $0x2d0] sm:$0xff] }
 0x179   :  { %v2170_v63 = vpack.c.bf16 %v1309_v60, %v1307_v59 }
 0x17b   :  { %2043 = vmatpush1.bf16.msra.mxu1 %v2042_v7  ;;  %v2078_v7 = vpack.c.bf16 %v363_v6, %v359_v4  ;;  %v2174_v4 = vpack.c.bf16 %v1313_v2, %v1311_v31  ;;  %v1347_v2 = vld [vmem:[%s2601_s6] sm:$0x3]  ;;  %s2390_s6 = smov [#allocation12]  }
 0x17c   :  { %2045 = vmatprep.subr.bf16.mxu1 %v2044_v10  ;;  %v2550_v10 = vsub.s32 0, %v2547_v9  ;;  %s1551_s15 = sshll.u32 %s2390_s6, 4  ;;  %s1552_s15 = int_to_ptr.vmem [resolvable:$true] %s1551_s15 }
 0x17d   :  { %s2351_s17 = scalar_lea.vmem %s1552_s15, 256  ;;  %p2356_p13 = scmp.lt.s32.totalorder %s1552_s15, %s1552_s15 }
 0x17e   :  { %v1194_v13 = vrot.slane %v2555_v11, %v2550_v10  ;;  %p2352_p12 = scmp.ne.s32.totalorder %s1552_s15, %s2351_s17  ;;  %p2357_p0 = scmp.lt.s32.totalorder %s2351_s17, %s2351_s17 }
 0x17f   :  { %2047 = vmatpush1.bf16.msra.mxu1 %v2046_v22  ;;  %v1283_v22 = vld [vmem:[#allocation11 + $0x200] sm:$0xff] }
 0x180   :  { %2049 = vmatprep.subr.bf16.mxu1 %v2048_v23  ;;  %v1285_v23 = vld [vmem:[#allocation11 + $0x210] sm:$0xff]  ;;  %p2358_p1 = por %p2357_p0, %p2356_p13 }
 0x182   :  { %p2359_p2 = pnand %p2358_p1, %p2352_p12 }
 0x183   :  { %2051 = vmatpush1.bf16.msra.mxu1 %v2050_v28  ;;  %v2146_v28 = vpack.c.bf16 %v1285_v23, %v1283_v22  ;;  %v1326_v22 = vld [vmem:[#allocation11 + $0x358] sm:$0xff] }
 0x184   :  { %2053 = vmatprep.subr.bf16.mxu1 %v2052_v33  ;;  %v1287_v33 = vld [vmem:[#allocation11 + $0x220] sm:$0xff] }
 0x187   :  { %2055 = vmatpush1.bf16.msra.mxu1 %v2054_v40  ;;  %v1296_v40 = vld [vmem:[#allocation11 + $0x268] sm:$0xff] }
 0x188   :  { %2057 = vmatprep.subr.bf16.mxu1 %v2056_v41  ;;  %v1298_v41 = vld [vmem:[#allocation11 + $0x278] sm:$0xff] }
 0x189   :  { %v2156_v44 = vpack.c.bf16 %v1298_v41, %v1296_v40  ;;  %v1336_v40 = vld [vmem:[#allocation11 + $0x3a8] sm:$0xff]  ;;  %v1338_v41 = vld [vmem:[#allocation11 + $0x3b8] sm:$0xff] }
 0x18b   :  { %2059 = vmatpush1.bf16.msra.mxu1 %v2058_v47  ;;  %v1300_v47 = vld [vmem:[#allocation11 + $0x288] sm:$0xff] }
 0x18c   :  { %2061 = vmatprep.subr.bf16.mxu1 %v2060_v48  ;;  %v1302_v48 = vld [vmem:[#allocation11 + $0x298] sm:$0xff] }
 0x18d   :  { %v2160_v50 = vpack.c.bf16 %v1302_v48, %v1300_v47  ;;  %v1340_v47 = vld [vmem:[#allocation11 + $0x3c8] sm:$0xff]  ;;  %v1342_v48 = vld [vmem:[#allocation11 + $0x3d8] sm:$0xff] }
 0x18f   :  { %2063 = vmatpush1.bf16.msra.mxu1 %v2062_v52  ;;  %v1304_v52 = vld [vmem:[#allocation11 + $0x2a8] sm:$0xff] }
 0x190   :  { %2065 = vmatprep.subr.bf16.mxu1 %v2064_v43  ;;  %v1306_v43 = vld [vmem:[#allocation11 + $0x2b8] sm:$0xff] }
 0x191   :  { %v2164_v53 = vpack.c.bf16 %v1306_v43, %v1304_v52  ;;  %v1344_v52 = vld [vmem:[#allocation11 + $0x3e8] sm:$0xff]  ;;  %v1346_v43 = vld [vmem:[#allocation11 + $0x3f8] sm:$0xff] }
 0x193   :  { %2067 = vmatpush1.bf16.msra.mxu1 %v2066_v56  ;;  %v1308_v56 = vld [vmem:[#allocation11 + $0x2c8] sm:$0xff] }
 0x194   :  { %2069 = vmatprep.subr.bf16.mxu1 %v2068_v17  ;;  %v1310_v17 = vld [vmem:[#allocation11 + $0x2d8] sm:$0xff] }
 0x195   :  { %v2168_v58 = vpack.c.bf16 %v1310_v17, %v1308_v56  ;;  %v2206_v56 = vpack.c.bf16 %v1345_v55, %v1343_v54  ;;  %v1201_v17 = vsub.s32 2, %v2547_v9 }
 0x197   :  { %2071 = vmatpush1.bf16.msra.mxu1 %v2070_v61  ;;  %v1312_v61 = vld [vmem:[#allocation11 + $0x2e8] sm:$0xff] }
 0x198   :  { %2073 = vmatprep.subr.bf16.mxu1 %v2072_v62  ;;  %v1314_v62 = vld [vmem:[#allocation11 + $0x2f8] sm:$0xff] }
 0x199   :  { %v2172_v0 = vpack.c.bf16 %v1314_v62, %v1312_v61 }
 0x19b   :  { %2075 = vmatpush1.bf16.msra.mxu1 %v2074_v20  ;;  %v1316_v20 = vld [vmem:[#allocation11 + $0x308] sm:$0xff] }
 0x19c   :  { %2077 = vmatprep.subr.bf16.mxu1 %v2076_v3  ;;  %v1318_v3 = vld [vmem:[#allocation11 + $0x318] sm:$0xff] }
 0x19d   :  { %v2176_v6 = vpack.c.bf16 %v1318_v3, %v1316_v20  ;;  %v1352_v20 = vrot.slane %v1347_v2, %v2550_v10 }
 0x19f   :  { %2079 = vmatpush1.bf16.msra.mxu1 %v2078_v7  ;;  %v1315_v7 = vld [vmem:[#allocation11 + $0x300] sm:$0xff] }
 0x1a2   :  { %1183 = vmatmul.mubr.f32.vlgmr.msra.gmra.mrb[2].mxu1 %v2536_v34  ;;  %v1198_v34 = vrot.slane %v2555_v11, %v2558_v12 }
 0x1f7   :  { %v1042_v14 = vpop.f32.mrb[0].mxu0 }
 0x1f8   :  { %v2208_v15 = vadd.f32 %v1042_v14, %v2542_v1  ;;  %v1044_v16 = vpop.f32.mrb[1].mxu0  ;;  %v2150_v1 = vpack.c.bf16 %v1289_v35, %v1287_v33  ;;  %v1322_v14 = vld [vmem:[#allocation11 + $0x338] sm:$0xff]  ;;  %v1327_v33 = vld [vmem:[#allocation11 + $0x360] sm:$0xff]  ;;  %v1329_v35 = vld [vmem:[#allocation11 + $0x370] sm:$0xff] }
 0x1f9   :  { %v2209_v19 = vadd.f32 %v1044_v16, %v2544_v5  ;;  %v2152_v5 = vpack.c.bf16 %v1294_v37, %v1292_v36  ;;  %v1319_v16 = vld [vmem:[#allocation11 + $0x320] sm:$0xff]  ;;  %v1332_v36 = vld [vmem:[#allocation11 + $0x388] sm:$0xff]  ;;  %v1334_v37 = vld [vmem:[#allocation11 + $0x398] sm:$0xff] }
 0x1fa   :  { %v1211_v21 = vadd.f32 %v2208_v15, %v1194_v13  ;;  %v1320_v13 = vld [vmem:[#allocation11 + $0x328] sm:$0xff] }
 0x1fb   :  { %v1212_v24 = vadd.f32 %v2209_v19, %v1198_v34  ;;  %v2178_v34 = vpack.c.bf16 %v1317_v8, %v1315_v7  ;;  %v2180_v15 = vpack.c.bf16 %v1322_v14, %v1320_v13  ;;  %v1321_v19 = vld [vmem:[#allocation11 + $0x330] sm:$0xff] }
 0x1fc   :  { %v1215_v29 = vmax.f32 %v1211_v21, 0.0  ;;  %v1324_v21 = vld [vmem:[#allocation11 + $0x348] sm:$0xff]  ;;  %v2182_v23 = vpack.c.bf16 %v1321_v19, %v1319_v16 }
 0x1fd   :  { %v1216_v27 = vmax.f32 %v1212_v24, 0.0  ;;  %v2184_v24 = vpack.c.bf16 %v1326_v22, %v1324_v21 }
 0x1ff   :  { %1423 = vmatprep.mubr.f32.mxu0 %v1216_v27  ;;  %v1328_v27 = vld [vmem:[#allocation11 + $0x368] sm:$0xff] }
 0x200   :  { %1424 = vmatmul.mubr.f32.vlgmr.msra.gmra.mrb[2].mxu0 %v1215_v29  ;;  %v2186_v29 = vpack.c.bf16 %v1325_v26, %v1323_v25 }
 0x201   :  { %2147 = vmatpush1.bf16.msra.mxu0 %v2146_v28  ;;  %v1330_v28 = vld [vmem:[#allocation11 + $0x378] sm:$0xff] }
 0x202   :  { %2149 = vmatprep.subr.bf16.mxu0 %v2148_v32  ;;  %v2188_v32 = vpack.c.bf16 %v1330_v28, %v1328_v27 }
 0x205   :  { %2151 = vmatpush1.bf16.msra.mxu0 %v2150_v1  ;;  %v2190_v1 = vpack.c.bf16 %v1329_v35, %v1327_v33 }
 0x206   :  { %2153 = vmatprep.subr.bf16.mxu0 %v2152_v5  ;;  %v2192_v5 = vpack.c.bf16 %v1334_v37, %v1332_v36 }
 0x209   :  { %2155 = vmatpush1.bf16.msra.mxu0 %v2154_v42  ;;  %v2194_v42 = vpack.c.bf16 %v1333_v39, %v1331_v38 }
 0x20a   :  { %2157 = vmatprep.subr.bf16.mxu0 %v2156_v44  ;;  %v2196_v44 = vpack.c.bf16 %v1338_v41, %v1336_v40 }
 0x20d   :  { %2159 = vmatpush1.bf16.msra.mxu0 %v2158_v49  ;;  %v2198_v49 = vpack.c.bf16 %v1337_v46, %v1335_v45 }
 0x20e   :  { %2161 = vmatprep.subr.bf16.mxu0 %v2160_v50  ;;  %v2200_v50 = vpack.c.bf16 %v1342_v48, %v1340_v47 }
 0x211   :  { %2163 = vmatpush1.bf16.msra.mxu0 %v2162_v18  ;;  %v2202_v18 = vpack.c.bf16 %v1341_v51, %v1339_v30 }
 0x212   :  { %2165 = vmatprep.subr.bf16.mxu0 %v2164_v53  ;;  %v2204_v53 = vpack.c.bf16 %v1346_v43, %v1344_v52 }
 0x215   :  { %2167 = vmatpush1.bf16.msra.mxu0 %v2166_v57  ;;  %v1205_v57 = vsub.s32 3, %v2547_v9  ;;  %v1356_v9 = vrot.slane %v1347_v2, %v2558_v12 }
 0x216   :  { %2169 = vmatprep.subr.bf16.mxu0 %v2168_v58  ;;  %v1202_v58 = vrot.slane %v2555_v11, %v1201_v17 }
 0x217   :  { %v1206_v59 = vrot.slane %v2555_v11, %v1205_v57 }
 0x219   :  { %2171 = vmatpush1.bf16.msra.mxu0 %v2170_v63 }
 0x21a   :  { %2173 = vmatprep.subr.bf16.mxu0 %v2172_v0 }
 0x21d   :  { %2175 = vmatpush1.bf16.msra.mxu0 %v2174_v4 }
 0x21e   :  { %2177 = vmatprep.subr.bf16.mxu0 %v2176_v6 }
 0x221   :  { %2179 = vmatpush1.bf16.msra.mxu0 %v2178_v34 }
 0x222   :  { %2181 = vmatprep.subr.bf16.mxu0 %v2180_v15  ;;  %v1512_v15 = vld [vmem:[%s2602_s7] sm:$0x3] }
 0x223   :  { %v1517_v16 = vrot.slane %v1512_v15, %v2550_v10  ;;  %v1521_v19 = vrot.slane %v1512_v15, %v2558_v12 }
 0x225   :  { %2183 = vmatpush1.bf16.msra.mxu0 %v2182_v23 }
 0x226   :  { %2185 = vmatprep.subr.bf16.mxu0 %v2184_v24 }
 0x229   :  { %2187 = vmatpush1.bf16.msra.mxu0 %v2186_v29 }
 0x22a   :  { %2189 = vmatprep.subr.bf16.mxu0 %v2188_v32 }
 0x22d   :  { %2191 = vmatpush1.bf16.msra.mxu0 %v2190_v1 }
 0x22e   :  { %2193 = vmatprep.subr.bf16.mxu0 %v2192_v5 }
 0x231   :  { %2195 = vmatpush1.bf16.msra.mxu0 %v2194_v42 }
 0x232   :  { %2197 = vmatprep.subr.bf16.mxu0 %v2196_v44 }
 0x235   :  { %2199 = vmatpush1.bf16.msra.mxu0 %v2198_v49 }
 0x236   :  { %2201 = vmatprep.subr.bf16.mxu0 %v2200_v50 }
 0x239   :  { %2203 = vmatpush1.bf16.msra.mxu0 %v2202_v18 }
 0x23a   :  { %2205 = vmatprep.subr.bf16.mxu0 %v2204_v53 }
 0x23d   :  { %2207 = vmatpush1.bf16.msra.mxu0 %v2206_v56 }
 0x275   :  { %v1184_v60 = vpop.f32.mrb[2].mxu1 }
 0x276   :  { %v1213_v61 = vadd.f32 %v1202_v58, %v1184_v60  ;;  %v1186_v62 = vpop.f32.mrb[3].mxu1 }
 0x277   :  { %v1214_v63 = vadd.f32 %v1206_v59, %v1186_v62 }
 0x278   :  { %v1217_v31 = vmax.f32 %v1213_v61, 0.0 }
 0x279   :  { %v1218_v0 = vmax.f32 %v1214_v63, 0.0 }
 0x27b   :  { %1494 = vmatprep.mubr.f32.mxu0 %v1218_v0 }
 0x27c   :  { %1495 = vmatmul.mubr.f32.vlgmr.msra.gmra.mrb[2].mxu0 %v1217_v31 }
 0x34f   :  { %v1496_v3 = vpop.f32.mrb[2].mxu0 }
 0x350   :  { %v2210_v4 = vadd.f32 %v1496_v3, %v1352_v20  ;;  %v1498_v6 = vpop.f32.mrb[3].mxu0 }
 0x351   :  { %v2211_v11 = vadd.f32 %v1498_v6, %v1356_v9 }
 0x352   :  { %v1501_v7 = vmul.f32 %v2210_v4, %v2210_v4 }
 0x353   :  { %v1502_v8 = vmul.f32 %v2211_v11, %v2211_v11 }
 0x355   :  { %v1503_v13 = vadd.f32 %v1502_v8, %v1501_v7 }
 0x357   :  { %1504 = vadd.xlane.f32.xlu0 %v1503_v13 }
 0x3e4   :  { %v1505_v14 = vpop.xlane.xlu0 %1504 }
 0x3e5   :  { %v1506_v34 = vmax.f32 %v1505_v14, 1e-24 }
 0x3e7   :  { %2234 = vrsqrt.f32 %v1506_v34 }
 0x3f1   :  { %v2235_v21 = vpop.eup %2234 }
 0x3f2   :  { %v1508_v22 = vmul.f32 %v2235_v21, %v2210_v4  ;;  %v1509_v23 = vmul.f32 %v2235_v21, %v2211_v11 }
 0x3f4   :  { %v1524_v24 = vmul.f32 %v1517_v16, %v1508_v22  ;;  %v1525_v25 = vmul.f32 %v1521_v19, %v1509_v23  ;;  %1510 = vst [vmem:[#allocation12] sm:$0xff] %v1508_v22  ;;  %1511 = vst [vmem:[#allocation12 + $0x8] sm:$0xff] %v1509_v23 }
 0x3f6   :  { %v1526_v26 = vadd.f32 %v1525_v25, %v1524_v24 }
 0x3f8   :  { %1527 = vadd.xlane.f32.xlu0 %v1526_v26 }
 0x3f9   :  { %2362 = shalt.err (!%p2359_p2)
}
 0x3fa   :  { %s2363_s19 = scalar_lea.hbm %s2604_s9, 256 }
 0x3fb   :  { %p2364_p3 = scmp.ne.s32.totalorder %s2604_s9, %s2363_s19  ;;  %p2367_p4 = scmp.lt.u32.totalorder %s2363_s19, %s2604_s9 }
 0x3fd   :  { %p2369_p5 = pnand %p2367_p4, %p2364_p3 }
 0x3ff   :  { %2372 = shalt.err (!%p2369_p5)
}
 0x400   :  { %1554 = dma.vmem_to_hbm [thread:$0]  %s1552_s15, 256, %s2604_s9, [#allocation5]   ;;  %v1566_v10 = vld [vmem:[#allocation2] ss:$0 sm:$0xff]  ;;  %vm1543_vm0 = vcmask 7168  }
 0x485   :  { %v1528_v12 = vpop.xlane.xlu0 %1527 }
 0x486   :  { %v1536_v27 = vadd.f32 %v1566_v10, %v1528_v12 }
 0x488   :  { %v1567_v28 = vmul.f32 -1.442695, %v1536_v27 }
 0x48a   :  { %2236 = vpow2.f32 %v1567_v28 }
 0x494   :  { %v2237_v29 = vpop.eup %2236 }
 0x495   :  { %v1540_v32 = vadd.f32 1.0, %v2237_v29 }
 0x497   :  { %2238 = vrcp.f32 %v1540_v32 }
 0x4a1   :  { %v2239_v33 = vpop.eup %2238 }
 0x4a2   :  { %1544 = vst.msk [vmem:[%s2605_s10] sm:$0xff] %vm1543_vm0, %v2239_v33 }
 0x4a3   :  { %2379 = dma.done.wait [#allocation5], 256  }
 0x4a4   :  { %2380 = vsyncadd [#allocation5], 4294967040 }
 0x4a5   :  { %1562 = vsyncpa [#allocation4], 1 }
 0x4a6   :  { %1563 = vsyncpa [#allocation7], 1 }
 0x4a7   :  { %1564 = vsyncpa [#allocation10], 1 }
 0x4a8   :  { %1565 = vsyncpa [#allocation5], 1 }

</bundles_post_ra>
